<compile_context>
chip_gen: v6e
topology: v6e:2x2x1
jax: 0.10.0
libtpu: 0.0.40
codegen_flags: <defaults>
</compile_context>

<pallas_src>
import functools

import jax
import jax.numpy as jnp
from jax import lax
from jax.experimental import pallas as pl
from jax.experimental.pallas import tpu as pltpu


def _downsample_kernel(p1_ref, w1_ref, b1_ref, alpha2_ref, w2_ref, b2_ref,
                       o_ref, ypad_ref, *, ho, wo, c1):
    """Per-image fused forward.

    p1_ref     : (1, M, 9*C0)       bf16  stage-1 im2col patches (un-padded K)
    w1_ref     : (9*C0, C1)         bf16  stage-1 folded weights (row = (kh*3+kw)*C0 + ci)
    b1_ref     : (1, C1)            f32
    alpha2_ref : (1, C1)            f32   PReLU-2 per-channel slopes
    w2_ref     : (9, C1, C2)        bf16  stage-2 per-tap weights (t = kh*3 + kw)
    b2_ref     : (1, C2)            f32
    o_ref      : (1, M, C2)         f32   exact-size output store (no channel padding)
    ypad_ref   : (ho+2, wo+2, C1)   bf16  VMEM: spatially padded intermediate
    """
    m = ho * wo

    # ---- Stage 1: 3x3 stride-2 conv as ONE (M, 9*C0) @ (9*C0, C1) GEMM ----
    z1 = jnp.dot(p1_ref[0], w1_ref[...], preferred_element_type=jnp.float32)
    z1 = z1 + b1_ref[...]                                            # (M, C1) f32

    # ---- Stage-2 PReLU applied once on the VMEM-resident intermediate ----
    a1 = jnp.where(z1 > 0, z1, z1 * alpha2_ref[...])                 # (M, C1) f32

    # ---- Spatially padded intermediate in a tiny bf16 scratch ----
    # Zero only the 1-wide border (cheap) every step: safe even when the batch
    # grid axis is sharded across TensorCores (scratch is uninitialized per core).
    zrow = jnp.zeros((1, wo + 2, c1), ypad_ref.dtype)
    zcol = jnp.zeros((ho + 2, 1, c1), ypad_ref.dtype)
    ypad_ref[0:1, :, :] = zrow
    ypad_ref[ho + 1:ho + 2, :, :] = zrow
    ypad_ref[:, 0:1, :] = zcol
    ypad_ref[:, wo + 1:wo + 2, :] = zcol
    # Interior written once, cast to bf16 once (the stage-2 operand dtype).
    ypad_ref[1:1 + ho, 1:1 + wo, :] = a1.reshape(ho, wo, c1).astype(ypad_ref.dtype)

    # ---- Stage 2: 3x3 stride-1 conv as 9 accumulating (M, C1) @ (C1, C2) GEMMs ----
    # No (M, 9*C1) im2col scratch; the per-kh row slab is loaded once and the three
    # kw shifts are derived from it.
    acc = None
    for kh in range(3):
        slab = ypad_ref[kh:kh + ho, :, :]                            # (ho, wo+2, C1) bf16
        for kw in range(3):
            part = slab[:, kw:kw + wo, :].reshape(m, c1)             # (M, C1) bf16
            d = jnp.dot(part, w2_ref[kh * 3 + kw],
                        preferred_element_type=jnp.float32)          # (M, C2) f32
            acc = d if acc is None else acc + d

    o_ref[0] = (acc + b2_ref[...]).astype(o_ref.dtype)


def downsample_forward(params, x_nchw, *, compute_dtype=jnp.bfloat16):
    """Downsample.forward: NCHW in -> NCHW out."""
    n, c0, h, w = x_nchw.shape
    c1 = params['b1'].shape[0]
    c2 = params['b2'].shape[0]
    ho = (h + 2 - 3) // 2 + 1          # stride-2 output spatial dims (stage 2 preserves them)
    wo = (w + 2 - 3) // 2 + 1
    m = ho * wo
    k1 = 9 * c0                        # un-padded stage-1 contraction dim

    # ---- Stage-1 PReLU applied ONCE (in f32), then cast to bf16 BEFORE the
    #      tap concatenation so the im2col build moves half the bytes. ----
    x = jnp.transpose(x_nchw, (0, 2, 3, 1)).astype(jnp.float32)               # NHWC
    a0 = jnp.where(x > 0, x, x * params['alpha1'].reshape(1, 1, 1, c0))
    a0 = a0.astype(compute_dtype)
    a0p = jnp.pad(a0, ((0, 0), (1, 1), (1, 1), (0, 0)))

    # ---- Stage-1 im2col, taps folded into K (stride 2 => ~1.1x raw input bytes,
    #      no lane padding: Mosaic pads the GEMM operands internally). ----
    taps = [a0p[:, kh:kh + 2 * ho:2, kw:kw + 2 * wo:2, :]
            for kh in range(3) for kw in range(3)]                            # t = kh*3 + kw
    p1 = jnp.concatenate(taps, axis=-1).reshape(n, m, k1)                     # (N, M, 9*C0) bf16

    # ---- Fold parameters (no channel padding anywhere) ----
    w1 = jnp.transpose(params['w1'], (2, 3, 1, 0)).reshape(k1, c1).astype(compute_dtype)
    b1 = params['b1'].reshape(1, c1).astype(jnp.float32)
    alpha2 = params['alpha2'].reshape(1, c1).astype(jnp.float32)
    w2 = jnp.transpose(params['w2'], (2, 3, 1, 0)).reshape(9, c1, c2).astype(compute_dtype)
    b2 = params['b2'].reshape(1, c2).astype(jnp.float32)

    kernel = functools.partial(_downsample_kernel, ho=ho, wo=wo, c1=c1)

    out = pl.pallas_call(
        kernel,
        out_shape=jax.ShapeDtypeStruct((n, m, c2), jnp.float32),
        grid_spec=pltpu.PrefetchScalarGridSpec(
            num_scalar_prefetch=0,
            grid=(n,),                                       # one image per step
            in_specs=[
                pl.BlockSpec((1, m, k1), lambda b: (b, 0, 0)),       # stage-1 patches
                pl.BlockSpec((k1, c1), lambda b: (0, 0)),            # w1 (folded)
                pl.BlockSpec((1, c1), lambda b: (0, 0)),             # b1
                pl.BlockSpec((1, c1), lambda b: (0, 0)),             # alpha2
                pl.BlockSpec((9, c1, c2), lambda b: (0, 0, 0)),      # w2 (per-tap)
                pl.BlockSpec((1, c2), lambda b: (0, 0)),             # b2
            ],
            out_specs=pl.BlockSpec((1, m, c2), lambda b: (b, 0, 0)),
            scratch_shapes=[
                pltpu.VMEM((ho + 2, wo + 2, c1), compute_dtype),     # padded intermediate (bf16)
            ],
        ),
        compiler_params=pltpu.CompilerParams(
            dimension_semantics=("parallel",)),
    )(p1, w1, b1, alpha2, w2, b2)

    y = out.reshape(n, ho, wo, c2)                       # exact size, nothing to slice off
    return jnp.transpose(y, (0, 3, 1, 2))                # NHWC -> NCHW


def init_downsample_params(key, int_channels):
    """Deterministic synthetic parameters matching the module's shapes."""
    c0, c1, c2 = int_channels
    k = jax.random.split(key, 6)

    def conv_init(kw_, kb_, cin, cout):
        fan_in = cin * 9
        bound = 1.0 / (fan_in ** 0.5)
        w = jax.random.uniform(kw_, (cout, cin, 3, 3), jnp.float32, -bound, bound)
        b = jax.random.uniform(kb_, (cout,), jnp.float32, -bound, bound)
        return w, b

    alpha1 = jnp.full((c0,), 0.25, jnp.float32) + 0.01 * jax.random.normal(k[0], (c0,))
    w1, b1 = conv_init(k[1], k[2], c0, c1)
    alpha2 = jnp.full((c1,), 0.25, jnp.float32) + 0.01 * jax.random.normal(k[3], (c1,))
    w2, b2 = conv_init(k[4], k[5], c1, c2)
    return dict(alpha1=alpha1, w1=w1, b1=b1, alpha2=alpha2, w2=w2, b2=b2)


def _ref_forward(params, x_nchw):
    """Pure-JAX f32 reference (lax.conv) for correctness checking."""
    def prelu(x, a):
        return jnp.where(x > 0, x, x * a.reshape(1, 1, 1, -1))

    def conv(x, w_oihw, b, stride):
        w_hwio = jnp.transpose(w_oihw, (2, 3, 1, 0))
        y = lax.conv_general_dilated(
            x, w_hwio, window_strides=(stride, stride),
            padding=((1, 1), (1, 1)),
            dimension_numbers=('NHWC', 'HWIO', 'NHWC'))
        return y + b.reshape(1, 1, 1, -1)

    x = jnp.transpose(x_nchw, (0, 2, 3, 1))
    y = conv(prelu(x, params['alpha1']), params['w1'], params['b1'], 2)
    y = conv(prelu(y, params['alpha2']), params['w2'], params['b2'], 1)
    return jnp.transpose(y, (0, 3, 1, 2))


if __name__ == "__main__":
    key = jax.random.PRNGKey(0)
    k_x, k_p = jax.random.split(key)

    int_channels = [4, 8, 8]                                   # intChannels = [C0, C1, C2]
    x = jax.random.normal(k_x, (2, 4, 16, 16), jnp.float32)    # NCHW input
    params = init_downsample_params(k_p, int_channels)

    fwd = jax.jit(downsample_forward)
    out = jax.block_until_ready(fwd(params, x))

    assert out.shape == (2, 8, 8, 8), out.shape                # stride-2 conv halves 16 -> 8

    ref = jax.block_until_ready(_ref_forward(params, x))
    max_err = float(jnp.max(jnp.abs(out - ref)))
    # Tolerance accounts for bf16 matmul operands (f32 accumulation); observed error << this.
    assert jnp.allclose(out, ref, rtol=5e-2, atol=5e-2), max_err

    print("KERNEL_OK")
</pallas_src>

<mosaic_0001>
module attributes {stable_mosaic.version = 11 : i64} {
  func.func @_downsample_kernel(%arg0: i32, %arg1: memref<1x64x36xbf16, #tpu.memory_space<vmem>>, %arg2: memref<36x8xbf16, #tpu.memory_space<vmem>>, %arg3: memref<1x8xf32, #tpu.memory_space<vmem>>, %arg4: memref<1x8xf32, #tpu.memory_space<vmem>>, %arg5: memref<9x8x8xbf16, #tpu.memory_space<vmem>>, %arg6: memref<1x8xf32, #tpu.memory_space<vmem>>, %arg7: memref<1x64x8xf32, #tpu.memory_space<vmem>>, %arg8: memref<10x10x8xbf16, #tpu.memory_space<vmem>>) attributes {dimension_semantics = [#tpu.dimension_semantics<parallel>], iteration_bounds = array<i64: 2>, scalar_prefetch = 0 : i64, scratch_operands = 1 : i64, tpu.core_type = #tpu.core_type<tc>, window_params = [{transform_indices = @transform_0, window_bounds = array<i64: 1, 64, 36>}, {pipeline_mode = #tpu.pipeline_mode<synchronous>, transform_indices = @transform_1, window_bounds = array<i64: 36, 8>}, {pipeline_mode = #tpu.pipeline_mode<synchronous>, transform_indices = @transform_2, window_bounds = array<i64: 1, 8>}, {pipeline_mode = #tpu.pipeline_mode<synchronous>, transform_indices = @transform_3, window_bounds = array<i64: 1, 8>}, {pipeline_mode = #tpu.pipeline_mode<synchronous>, transform_indices = @transform_4, window_bounds = array<i64: 9, 8, 8>}, {pipeline_mode = #tpu.pipeline_mode<synchronous>, transform_indices = @transform_5, window_bounds = array<i64: 1, 8>}, {transform_indices = @transform_6, window_bounds = array<i64: 1, 64, 8>}]} {
    %c0 = arith.constant 0 : index
    %c0_0 = arith.constant 0 : index
    %c0_1 = arith.constant 0 : index
    %0 = vector.load %arg1[%c0, %c0_0, %c0_1] : memref<1x64x36xbf16, #tpu.memory_space<vmem>>, vector<1x64x36xbf16>
    %1 = vector.shape_cast %0 : vector<1x64x36xbf16> to vector<64x36xbf16>
    %c0_2 = arith.constant 0 : index
    %c0_3 = arith.constant 0 : index
    %2 = vector.load %arg2[%c0_2, %c0_3] : memref<36x8xbf16, #tpu.memory_space<vmem>>, vector<36x8xbf16>
    %cst = arith.constant dense<0.000000e+00> : vector<64x8xf32>
    %3 = tpu.matmul %1, %2, %cst {dimension_numbers = #tpu.dot_dimension_numbers<[1], [0], [0], [1], [0, 0, 1, 1], [], []>} : vector<64x36xbf16>, vector<36x8xbf16>, vector<64x8xf32> -> vector<64x8xf32>
    %c0_4 = arith.constant 0 : index
    %c0_5 = arith.constant 0 : index
    %4 = vector.load %arg3[%c0_4, %c0_5] : memref<1x8xf32, #tpu.memory_space<vmem>>, vector<1x8xf32>
    %5 = vector.broadcast %4 : vector<1x8xf32> to vector<64x8xf32>
    %6 = arith.addf %3, %5 : vector<64x8xf32>
    %cst_6 = arith.constant 0.000000e+00 : f32
    %7 = vector.broadcast %cst_6 : f32 to vector<64x8xf32>
    %8 = arith.cmpf ogt, %6, %7 : vector<64x8xf32>
    %c0_7 = arith.constant 0 : index
    %c0_8 = arith.constant 0 : index
    %9 = vector.load %arg4[%c0_7, %c0_8] : memref<1x8xf32, #tpu.memory_space<vmem>>, vector<1x8xf32>
    %10 = vector.broadcast %9 : vector<1x8xf32> to vector<64x8xf32>
    %11 = arith.mulf %6, %10 : vector<64x8xf32>
    %12 = arith.select %8, %6, %11 : vector<64x8xi1>, vector<64x8xf32>
    %cst_9 = arith.constant 0.000000e+00 : bf16
    %13 = vector.broadcast %cst_9 : bf16 to vector<1x10x8xbf16>
    %cst_10 = arith.constant 0.000000e+00 : bf16
    %14 = vector.broadcast %cst_10 : bf16 to vector<10x1x8xbf16>
    %c0_11 = arith.constant 0 : index
    %c0_12 = arith.constant 0 : index
    %c0_13 = arith.constant 0 : index
    %15 = vector.load %arg8[%c0_11, %c0_12, %c0_13] : memref<10x10x8xbf16, #tpu.memory_space<vmem>>, vector<1x10x8xbf16>
    tpu.vector_store %arg8[%c0_11, %c0_12, %c0_13], %13 {strides = array<i32>} : memref<10x10x8xbf16, #tpu.memory_space<vmem>>, vector<1x10x8xbf16>,
    %c9 = arith.constant 9 : index
    %c0_14 = arith.constant 0 : index
    %c0_15 = arith.constant 0 : index
    %16 = vector.load %arg8[%c9, %c0_14, %c0_15] : memref<10x10x8xbf16, #tpu.memory_space<vmem>>, vector<1x10x8xbf16>
    tpu.vector_store %arg8[%c9, %c0_14, %c0_15], %13 {strides = array<i32>} : memref<10x10x8xbf16, #tpu.memory_space<vmem>>, vector<1x10x8xbf16>,
    %c0_16 = arith.constant 0 : index
    %c0_17 = arith.constant 0 : index
    %c0_18 = arith.constant 0 : index
    %17 = vector.load %arg8[%c0_16, %c0_17, %c0_18] : memref<10x10x8xbf16, #tpu.memory_space<vmem>>, vector<10x1x8xbf16>
    tpu.vector_store %arg8[%c0_16, %c0_17, %c0_18], %14 {strides = array<i32>} : memref<10x10x8xbf16, #tpu.memory_space<vmem>>, vector<10x1x8xbf16>,
    %c0_19 = arith.constant 0 : index
    %c9_20 = arith.constant 9 : index
    %c0_21 = arith.constant 0 : index
    %18 = vector.load %arg8[%c0_19, %c9_20, %c0_21] : memref<10x10x8xbf16, #tpu.memory_space<vmem>>, vector<10x1x8xbf16>
    tpu.vector_store %arg8[%c0_19, %c9_20, %c0_21], %14 {strides = array<i32>} : memref<10x10x8xbf16, #tpu.memory_space<vmem>>, vector<10x1x8xbf16>,
    %19 = vector.shape_cast %12 : vector<64x8xf32> to vector<8x8x8xf32>
    %20 = arith.truncf %19 : vector<8x8x8xf32> to vector<8x8x8xbf16>
    %c1 = arith.constant 1 : index
    %c1_22 = arith.constant 1 : index
    %c0_23 = arith.constant 0 : index
    %21 = vector.load %arg8[%c1, %c1_22, %c0_23] : memref<10x10x8xbf16, #tpu.memory_space<vmem>>, vector<8x8x8xbf16>
    tpu.vector_store %arg8[%c1, %c1_22, %c0_23], %20 {strides = array<i32>} : memref<10x10x8xbf16, #tpu.memory_space<vmem>>, vector<8x8x8xbf16>,
    %c0_24 = arith.constant 0 : index
    %c0_25 = arith.constant 0 : index
    %c0_26 = arith.constant 0 : index
    %22 = vector.load %arg8[%c0_24, %c0_25, %c0_26] : memref<10x10x8xbf16, #tpu.memory_space<vmem>>, vector<8x10x8xbf16>
    %23 = vector.extract_strided_slice %22 {offsets = [0, 0, 0], sizes = [8, 8, 8], strides = [1, 1, 1]} : vector<8x10x8xbf16> to vector<8x8x8xbf16>
    %24 = vector.shape_cast %23 : vector<8x8x8xbf16> to vector<64x8xbf16>
    %c0_27 = arith.constant 0 : index
    %c0_28 = arith.constant 0 : index
    %c0_29 = arith.constant 0 : index
    %25 = vector.load %arg5[%c0_27, %c0_28, %c0_29] : memref<9x8x8xbf16, #tpu.memory_space<vmem>>, vector<1x8x8xbf16>
    %26 = vector.shape_cast %25 : vector<1x8x8xbf16> to vector<8x8xbf16>
    %cst_30 = arith.constant dense<0.000000e+00> : vector<64x8xf32>
    %27 = tpu.matmul %24, %26, %cst_30 {dimension_numbers = #tpu.dot_dimension_numbers<[1], [0], [0], [1], [0, 0, 1, 1], [], []>} : vector<64x8xbf16>, vector<8x8xbf16>, vector<64x8xf32> -> vector<64x8xf32>
    %28 = vector.extract_strided_slice %22 {offsets = [0, 1, 0], sizes = [8, 8, 8], strides = [1, 1, 1]} : vector<8x10x8xbf16> to vector<8x8x8xbf16>
    %29 = vector.shape_cast %28 : vector<8x8x8xbf16> to vector<64x8xbf16>
    %c1_31 = arith.constant 1 : index
    %c0_32 = arith.constant 0 : index
    %c0_33 = arith.constant 0 : index
    %30 = vector.load %arg5[%c1_31, %c0_32, %c0_33] : memref<9x8x8xbf16, #tpu.memory_space<vmem>>, vector<1x8x8xbf16>
    %31 = vector.shape_cast %30 : vector<1x8x8xbf16> to vector<8x8xbf16>
    %cst_34 = arith.constant dense<0.000000e+00> : vector<64x8xf32>
    %32 = tpu.matmul %29, %31, %cst_34 {dimension_numbers = #tpu.dot_dimension_numbers<[1], [0], [0], [1], [0, 0, 1, 1], [], []>} : vector<64x8xbf16>, vector<8x8xbf16>, vector<64x8xf32> -> vector<64x8xf32>
    %33 = arith.addf %27, %32 : vector<64x8xf32>
    %34 = vector.extract_strided_slice %22 {offsets = [0, 2, 0], sizes = [8, 8, 8], strides = [1, 1, 1]} : vector<8x10x8xbf16> to vector<8x8x8xbf16>
    %35 = vector.shape_cast %34 : vector<8x8x8xbf16> to vector<64x8xbf16>
    %c2 = arith.constant 2 : index
    %c0_35 = arith.constant 0 : index
    %c0_36 = arith.constant 0 : index
    %36 = vector.load %arg5[%c2, %c0_35, %c0_36] : memref<9x8x8xbf16, #tpu.memory_space<vmem>>, vector<1x8x8xbf16>
    %37 = vector.shape_cast %36 : vector<1x8x8xbf16> to vector<8x8xbf16>
    %cst_37 = arith.constant dense<0.000000e+00> : vector<64x8xf32>
    %38 = tpu.matmul %35, %37, %cst_37 {dimension_numbers = #tpu.dot_dimension_numbers<[1], [0], [0], [1], [0, 0, 1, 1], [], []>} : vector<64x8xbf16>, vector<8x8xbf16>, vector<64x8xf32> -> vector<64x8xf32>
    %39 = arith.addf %33, %38 : vector<64x8xf32>
    %c1_38 = arith.constant 1 : index
    %c0_39 = arith.constant 0 : index
    %c0_40 = arith.constant 0 : index
    %40 = vector.load %arg8[%c1_38, %c0_39, %c0_40] : memref<10x10x8xbf16, #tpu.memory_space<vmem>>, vector<8x10x8xbf16>
    %41 = vector.extract_strided_slice %40 {offsets = [0, 0, 0], sizes = [8, 8, 8], strides = [1, 1, 1]} : vector<8x10x8xbf16> to vector<8x8x8xbf16>
    %42 = vector.shape_cast %41 : vector<8x8x8xbf16> to vector<64x8xbf16>
    %c3 = arith.constant 3 : index
    %c0_41 = arith.constant 0 : index
    %c0_42 = arith.constant 0 : index
    %43 = vector.load %arg5[%c3, %c0_41, %c0_42] : memref<9x8x8xbf16, #tpu.memory_space<vmem>>, vector<1x8x8xbf16>
    %44 = vector.shape_cast %43 : vector<1x8x8xbf16> to vector<8x8xbf16>
    %cst_43 = arith.constant dense<0.000000e+00> : vector<64x8xf32>
    %45 = tpu.matmul %42, %44, %cst_43 {dimension_numbers = #tpu.dot_dimension_numbers<[1], [0], [0], [1], [0, 0, 1, 1], [], []>} : vector<64x8xbf16>, vector<8x8xbf16>, vector<64x8xf32> -> vector<64x8xf32>
    %46 = arith.addf %39, %45 : vector<64x8xf32>
    %47 = vector.extract_strided_slice %40 {offsets = [0, 1, 0], sizes = [8, 8, 8], strides = [1, 1, 1]} : vector<8x10x8xbf16> to vector<8x8x8xbf16>
    %48 = vector.shape_cast %47 : vector<8x8x8xbf16> to vector<64x8xbf16>
    %c4 = arith.constant 4 : index
    %c0_44 = arith.constant 0 : index
    %c0_45 = arith.constant 0 : index
    %49 = vector.load %arg5[%c4, %c0_44, %c0_45] : memref<9x8x8xbf16, #tpu.memory_space<vmem>>, vector<1x8x8xbf16>
    %50 = vector.shape_cast %49 : vector<1x8x8xbf16> to vector<8x8xbf16>
    %cst_46 = arith.constant dense<0.000000e+00> : vector<64x8xf32>
    %51 = tpu.matmul %48, %50, %cst_46 {dimension_numbers = #tpu.dot_dimension_numbers<[1], [0], [0], [1], [0, 0, 1, 1], [], []>} : vector<64x8xbf16>, vector<8x8xbf16>, vector<64x8xf32> -> vector<64x8xf32>
    %52 = arith.addf %46, %51 : vector<64x8xf32>
    %53 = vector.extract_strided_slice %40 {offsets = [0, 2, 0], sizes = [8, 8, 8], strides = [1, 1, 1]} : vector<8x10x8xbf16> to vector<8x8x8xbf16>
    %54 = vector.shape_cast %53 : vector<8x8x8xbf16> to vector<64x8xbf16>
    %c5 = arith.constant 5 : index
    %c0_47 = arith.constant 0 : index
    %c0_48 = arith.constant 0 : index
    %55 = vector.load %arg5[%c5, %c0_47, %c0_48] : memref<9x8x8xbf16, #tpu.memory_space<vmem>>, vector<1x8x8xbf16>
    %56 = vector.shape_cast %55 : vector<1x8x8xbf16> to vector<8x8xbf16>
    %cst_49 = arith.constant dense<0.000000e+00> : vector<64x8xf32>
    %57 = tpu.matmul %54, %56, %cst_49 {dimension_numbers = #tpu.dot_dimension_numbers<[1], [0], [0], [1], [0, 0, 1, 1], [], []>} : vector<64x8xbf16>, vector<8x8xbf16>, vector<64x8xf32> -> vector<64x8xf32>
    %58 = arith.addf %52, %57 : vector<64x8xf32>
    %c2_50 = arith.constant 2 : index
    %c0_51 = arith.constant 0 : index
    %c0_52 = arith.constant 0 : index
    %59 = vector.load %arg8[%c2_50, %c0_51, %c0_52] : memref<10x10x8xbf16, #tpu.memory_space<vmem>>, vector<8x10x8xbf16>
    %60 = vector.extract_strided_slice %59 {offsets = [0, 0, 0], sizes = [8, 8, 8], strides = [1, 1, 1]} : vector<8x10x8xbf16> to vector<8x8x8xbf16>
    %61 = vector.shape_cast %60 : vector<8x8x8xbf16> to vector<64x8xbf16>
    %c6 = arith.constant 6 : index
    %c0_53 = arith.constant 0 : index
    %c0_54 = arith.constant 0 : index
    %62 = vector.load %arg5[%c6, %c0_53, %c0_54] : memref<9x8x8xbf16, #tpu.memory_space<vmem>>, vector<1x8x8xbf16>
    %63 = vector.shape_cast %62 : vector<1x8x8xbf16> to vector<8x8xbf16>
    %cst_55 = arith.constant dense<0.000000e+00> : vector<64x8xf32>
    %64 = tpu.matmul %61, %63, %cst_55 {dimension_numbers = #tpu.dot_dimension_numbers<[1], [0], [0], [1], [0, 0, 1, 1], [], []>} : vector<64x8xbf16>, vector<8x8xbf16>, vector<64x8xf32> -> vector<64x8xf32>
    %65 = arith.addf %58, %64 : vector<64x8xf32>
    %66 = vector.extract_strided_slice %59 {offsets = [0, 1, 0], sizes = [8, 8, 8], strides = [1, 1, 1]} : vector<8x10x8xbf16> to vector<8x8x8xbf16>
    %67 = vector.shape_cast %66 : vector<8x8x8xbf16> to vector<64x8xbf16>
    %c7 = arith.constant 7 : index
    %c0_56 = arith.constant 0 : index
    %c0_57 = arith.constant 0 : index
    %68 = vector.load %arg5[%c7, %c0_56, %c0_57] : memref<9x8x8xbf16, #tpu.memory_space<vmem>>, vector<1x8x8xbf16>
    %69 = vector.shape_cast %68 : vector<1x8x8xbf16> to vector<8x8xbf16>
    %cst_58 = arith.constant dense<0.000000e+00> : vector<64x8xf32>
    %70 = tpu.matmul %67, %69, %cst_58 {dimension_numbers = #tpu.dot_dimension_numbers<[1], [0], [0], [1], [0, 0, 1, 1], [], []>} : vector<64x8xbf16>, vector<8x8xbf16>, vector<64x8xf32> -> vector<64x8xf32>
    %71 = arith.addf %65, %70 : vector<64x8xf32>
    %72 = vector.extract_strided_slice %59 {offsets = [0, 2, 0], sizes = [8, 8, 8], strides = [1, 1, 1]} : vector<8x10x8xbf16> to vector<8x8x8xbf16>
    %73 = vector.shape_cast %72 : vector<8x8x8xbf16> to vector<64x8xbf16>
    %c8 = arith.constant 8 : index
    %c0_59 = arith.constant 0 : index
    %c0_60 = arith.constant 0 : index
    %74 = vector.load %arg5[%c8, %c0_59, %c0_60] : memref<9x8x8xbf16, #tpu.memory_space<vmem>>, vector<1x8x8xbf16>
    %75 = vector.shape_cast %74 : vector<1x8x8xbf16> to vector<8x8xbf16>
    %cst_61 = arith.constant dense<0.000000e+00> : vector<64x8xf32>
    %76 = tpu.matmul %73, %75, %cst_61 {dimension_numbers = #tpu.dot_dimension_numbers<[1], [0], [0], [1], [0, 0, 1, 1], [], []>} : vector<64x8xbf16>, vector<8x8xbf16>, vector<64x8xf32> -> vector<64x8xf32>
    %77 = arith.addf %71, %76 : vector<64x8xf32>
    %c0_62 = arith.constant 0 : index
    %c0_63 = arith.constant 0 : index
    %78 = vector.load %arg6[%c0_62, %c0_63] : memref<1x8xf32, #tpu.memory_space<vmem>>, vector<1x8xf32>
    %79 = vector.broadcast %78 : vector<1x8xf32> to vector<64x8xf32>
    %80 = arith.addf %77, %79 : vector<64x8xf32>
    %c0_64 = arith.constant 0 : index
    %c0_65 = arith.constant 0 : index
    %c0_66 = arith.constant 0 : index
    %81 = vector.load %arg7[%c0_64, %c0_65, %c0_66] : memref<1x64x8xf32, #tpu.memory_space<vmem>>, vector<1x64x8xf32>
    %82 = vector.shape_cast %81 : vector<1x64x8xf32> to vector<64x8xf32>
    %83 = vector.shape_cast %80 : vector<64x8xf32> to vector<1x64x8xf32>
    tpu.vector_store %arg7[%c0_64, %c0_65, %c0_66], %83 {strides = array<i32>} : memref<1x64x8xf32, #tpu.memory_space<vmem>>, vector<1x64x8xf32>,
    return
  }
  func.func @transform_0(%arg0: i32) -> (i32, i32, i32) {
    %c0_i32 = arith.constant 0 : i32
    %c0_i32_0 = arith.constant 0 : i32
    %c0_i32_1 = arith.constant 0 : i32
    return %arg0, %c0_i32, %c0_i32_0 : i32, i32, i32
  }
  func.func @transform_1(%arg0: i32) -> (i32, i32) {
    %c0_i32 = arith.constant 0 : i32
    %c0_i32_0 = arith.constant 0 : i32
    %c0_i32_1 = arith.constant 0 : i32
    return %c0_i32, %c0_i32_0 : i32, i32
  }
  func.func @transform_2(%arg0: i32) -> (i32, i32) {
    %c0_i32 = arith.constant 0 : i32
    %c0_i32_0 = arith.constant 0 : i32
    %c0_i32_1 = arith.constant 0 : i32
    return %c0_i32, %c0_i32_0 : i32, i32
  }
  func.func @transform_3(%arg0: i32) -> (i32, i32) {
    %c0_i32 = arith.constant 0 : i32
    %c0_i32_0 = arith.constant 0 : i32
    %c0_i32_1 = arith.constant 0 : i32
    return %c0_i32, %c0_i32_0 : i32, i32
  }
  func.func @transform_4(%arg0: i32) -> (i32, i32, i32) {
    %c0_i32 = arith.constant 0 : i32
    %c0_i32_0 = arith.constant 0 : i32
    %c0_i32_1 = arith.constant 0 : i32
    %c0_i32_2 = arith.constant 0 : i32
    return %c0_i32, %c0_i32_0, %c0_i32_1 : i32, i32, i32
  }
  func.func @transform_5(%arg0: i32) -> (i32, i32) {
    %c0_i32 = arith.constant 0 : i32
    %c0_i32_0 = arith.constant 0 : i32
    %c0_i32_1 = arith.constant 0 : i32
    return %c0_i32, %c0_i32_0 : i32, i32
  }
  func.func @transform_6(%arg0: i32) -> (i32, i32, i32) {
    %c0_i32 = arith.constant 0 : i32
    %c0_i32_0 = arith.constant 0 : i32
    %c0_i32_1 = arith.constant 0 : i32
    return %arg0, %c0_i32, %c0_i32_0 : i32, i32, i32
  }
}

</mosaic_0001>

<bundles_post_ra>
// kernel: downsample_forward.1
= control target key start
LH: loop header
LB: loop body
LE: loop exit
PB: predicated region body
PF: predicated region fallthrough
CT: control target
= control target key end

     0   :  { %s2557_s21 = smov 0   ;;  %s3255_s0 = inlined_call_operand.vmem [shape: bf16[2,64,36], index: 0, kind: input, shape index: {}]   ;;  %s3256_s1 = inlined_call_operand.vmem [shape: bf16[36,8], index: 1, kind: input, shape index: {}]   ;;  %s3257_s2 = inlined_call_operand.vmem [shape: f32[1,8], index: 2, kind: input, shape index: {}]   ;;  %s3258_s3 = inlined_call_operand.vmem [shape: f32[1,8], index: 3, kind: input, shape index: {}]   ;;  %s3259_s4 = inlined_call_operand.vmem [shape: bf16[9,8,8], index: 4, kind: input, shape index: {}]   ;;  %s3260_s5 = inlined_call_operand.vmem [shape: f32[1,8], index: 5, kind: input, shape index: {}]   ;;  %s3261_s6 = inlined_call_operand.vmem [shape: f32[2,64,8], index: 6, kind: output, shape index: {}]  }
   0x1 LB: > { %s2172_s22 = sadd.s32 4294967295, %s2519_s21   ;;  %p2176_p0 = scmp.ge.s32.totalorder %s2519_s21, 1  ;;  %s2519_s21 = sphi %s2557_s21, %s16_s21  }
   0x2   : > { %p212_p1 = scmp.lt.s32.totalorder %s2519_s21, 3 }
   0x4   : > { %p213_p2 = pnand %p2176_p0, %p212_p1 }
   0x6   : > { %216 = sbr.rel (%p213_p2) target bundleno = 552 (0x228), region = 44 }
   0xb   : > { %v2494_v0 = vld [vmem:[%s3256_s1 + $0x10] ss:$0 sps:$4 sm:$0x33]   ;;  %vm321_vm0 = vcmask 1041408   ;;  %v2495_v1 = vld [vmem:[%s3256_s1 + $0x8] sm:$0xff]   ;;  %p242_p3 = scmp.lt.s32.totalorder %s2172_s22, 1 }
   0xc   : > { %2475 = vmatprep.subr.msk.bf16.mxu0 %vm321_vm0, %v2494_v0  ;;  %v323_v2 = vsel %vm321_vm0, %v2494_v0, 0  ;;  %v2496_v3 = vld [vmem:[%s3256_s1] sm:$0xff]   ;;  %vm308_vm1 = vcmask 293888   ;;  %vm423_vm2 = vcmask 57344   ;;  %vm429_vm3 = vsmask.f32 256 }
   0xd   : > { %2372 = vmatpush3.bf16.msra.mxu0 %v323_v2  ;;  %s3279_s22 = smov (!%p242_p3, %s2172_s22), 1  ;;  %vm461_vm4 = vsmask.f32 7938  ;;  %vm2580_vm5 = vmand %vm423_vm2, %vm429_vm3  ;;  %v440_v9 = vld [vmem:[#allocation2 + $0x18] sm:$0x1]  ;;  %vm421_vm6 = vcmask 60416  }
   0xe   : > { %2373 = vmatprep.subr.bf16.mxu0 %v2495_v1  ;;  %s2309_s29 = sshll.u32 %s3279_s22, 5  ;;  %v472_v10 = vld [vmem:[#allocation2 + $0x1c] sm:$0x1]  ;;  %v441_v11 = vsel %vm2580_vm5, 0, %v440_v9  ;;  %vm2587_vm7 = vmand %vm423_vm2, %vm461_vm4  ;;  %v2521_v13 = vmov 0   ;;  %vm815_vm9 = vcmask 1043456  }
   0xf   : > { %s246_s8 = scalar_lea.vmem %s3255_s0, %s2309_s29  ;;  %422 = vst.msk [vmem:[#allocation2] sm:$0xf] %vm421_vm6, %v2521_v13  ;;  %426 = vst.msk [vmem:[#allocation2 + $0x48] sm:$0xf] %vm421_vm6, %v2521_v13  ;;  %v473_v14 = vsel %vm2587_vm7, 0, %v472_v10  ;;  %vm992_vm10 = vcmask 1042432  }
  0x10   : > { %v2497_v4 = vld [vmem:[%s246_s8] sm:$0xff]   ;;  %v2498_v5 = vld [vmem:[%s246_s8 + $0x8] sm:$0xff]   ;;  %v2499_v6 = vld [vmem:[%s246_s8 + $0x10] sm:$0xff]   ;;  %424 = vst.msk [vmem:[#allocation2 + $0x4] sm:$0x1] %vm423_vm2, %v2521_v13  ;;  %vm993_vm11 = vcmask 1046532  }
  0x11   : > { %2374 = vmatpush3.bf16.msra.mxu0 %v2495_v1  ;;  %2377 = vmatprep.mubr.msk.bf16.mxu0 %vm308_vm1, %v2497_v4  ;;  %v2500_v7 = vld [vmem:[%s246_s8 + $0x18] sm:$0xff]   ;;  %427 = vst.msk [vmem:[#allocation2 + $0x4c] sm:$0x1] %vm423_vm2, %v2521_v13  ;;  %442 = vst [vmem:[#allocation2 + $0x18] sm:$0x1] %v441_v11  ;;  %s2310_s9 = sshll.u32 %s3279_s22, 6 }
  0x12   : > { %2375 = vmatprep.subr.bf16.mxu0 %v2496_v3  ;;  %v434_v15 = vld [vmem:[#allocation2 + $0x8] sm:$0x1]  ;;  %v466_v16 = vld [vmem:[#allocation2 + $0xc] sm:$0x1]  ;;  %474 = vst [vmem:[#allocation2 + $0x1c] sm:$0x1] %v473_v14  ;;  %vm2605_vm8 = vmand %vm421_vm6, %vm461_vm4  ;;  %s3227_s22 = scalar_lea.vmem %s3261_s6, %s2310_s9 }
  0x13   : > { %v435_v17 = vsel %vm2580_vm5, 0, %v434_v15  ;;  %v467_v18 = vsel %vm2587_vm7, 0, %v466_v16  ;;  %v443_v19 = vld [vmem:[#allocation2 + $0x20] sm:$0x1]  ;;  %v475_v20 = vld [vmem:[#allocation2 + $0x24] sm:$0x1]  ;;  %vm2684_vm14 = vmor %vm992_vm10, %vm993_vm11 }
  0x14   : > { %436 = vst [vmem:[#allocation2 + $0x8] sm:$0x1] %v435_v17  ;;  %468 = vst [vmem:[#allocation2 + $0xc] sm:$0x1] %v467_v18  ;;  %v444_v21 = vsel %vm2580_vm5, 0, %v443_v19  ;;  %v476_v22 = vsel %vm2587_vm7, 0, %v475_v20 }
  0x15   : > { %2376 = vmatpush3.bf16.msra.mxu0 %v2496_v3  ;;  %445 = vst [vmem:[#allocation2 + $0x20] sm:$0x1] %v444_v21  ;;  %477 = vst [vmem:[#allocation2 + $0x24] sm:$0x1] %v476_v22  ;;  %v437_v23 = vld [vmem:[#allocation2 + $0x10] sm:$0x1] }
  0x16   : > { %v469_v24 = vld [vmem:[#allocation2 + $0x14] sm:$0x1]  ;;  %v438_v26 = vsel %vm2580_vm5, 0, %v437_v23  ;;  %v431_v28 = vld [vmem:[#allocation2] sm:$0x1]  ;;  %vm802_vm4 = vcmask 64512  }
  0x17   : > { %v470_v27 = vsel %vm2587_vm7, 0, %v469_v24  ;;  %v458_v29 = vld [vmem:[#allocation2 + $0x48] sm:$0x1]  ;;  %v463_v30 = vld [vmem:[#allocation2 + $0x4] sm:$0x1]  ;;  %v432_v31 = vsel %vm2580_vm5, 0, %v431_v28 }
  0x18   : > { %2378 = vmatmul.mubr.msk.bf16.vlgmr.msra.gmra.mxu0 %vm308_vm1, %v2498_v5  ;;  %439 = vst [vmem:[#allocation2 + $0x10] sm:$0x1] %v438_v26  ;;  %471 = vst [vmem:[#allocation2 + $0x14] sm:$0x1] %v470_v27  ;;  %v459_v32 = vsel %vm2580_vm5, 0, %v458_v29  ;;  %v464_v33 = vsel %vm2587_vm7, 0, %v463_v30 }
  0x19   : > { %2381 = vmatprep.mubr.msk.bf16.mxu0 %vm308_vm1, %v2499_v6  ;;  %v490_v34 = vld [vmem:[#allocation2 + $0x4c] sm:$0x1]  ;;  %433 = vst [vmem:[#allocation2] sm:$0x1] %v432_v31  ;;  %460 = vst [vmem:[#allocation2 + $0x48] sm:$0x1] %v459_v32 }
  0x1a   : > { %465 = vst [vmem:[#allocation2 + $0x4] sm:$0x1] %v464_v33  ;;  %v491_v35 = vsel %vm2587_vm7, 0, %v490_v34  ;;  %v452_v36 = vld [vmem:[#allocation2 + $0x38] sm:$0x1] }
  0x1b   : > { %492 = vst [vmem:[#allocation2 + $0x4c] sm:$0x1] %v491_v35  ;;  %v453_v37 = vsel %vm2580_vm5, 0, %v452_v36  ;;  %v484_v38 = vld [vmem:[#allocation2 + $0x3c] sm:$0x1] }
  0x1c   : > { %454 = vst [vmem:[#allocation2 + $0x38] sm:$0x1] %v453_v37  ;;  %v485_v39 = vsel %vm2587_vm7, 0, %v484_v38  ;;  %v446_v40 = vld [vmem:[#allocation2 + $0x28] sm:$0x1] }
  0x1d   : > { %486 = vst [vmem:[#allocation2 + $0x3c] sm:$0x1] %v485_v39  ;;  %v447_v41 = vsel %vm2580_vm5, 0, %v446_v40  ;;  %v478_v42 = vld [vmem:[#allocation2 + $0x2c] sm:$0x1] }
  0x1e   : > { %448 = vst [vmem:[#allocation2 + $0x28] sm:$0x1] %v447_v41  ;;  %v479_v43 = vsel %vm2587_vm7, 0, %v478_v42  ;;  %v455_v44 = vld [vmem:[#allocation2 + $0x40] sm:$0x1] }
  0x1f   : > { %480 = vst [vmem:[#allocation2 + $0x2c] sm:$0x1] %v479_v43  ;;  %v487_v45 = vld [vmem:[#allocation2 + $0x44] sm:$0x1]  ;;  %v456_v46 = vsel %vm2580_vm5, 0, %v455_v44 }
  0x20   : > { %2382 = vmatmul.mubr.msk.bf16.gmra.mxu0 %vm308_vm1, %v2500_v7  ;;  %v488_v47 = vsel %vm2587_vm7, 0, %v487_v45  ;;  %457 = vst [vmem:[#allocation2 + $0x40] sm:$0x1] %v456_v46  ;;  %v449_v48 = vld [vmem:[#allocation2 + $0x30] sm:$0x1] }
  0x21   : > { %489 = vst [vmem:[#allocation2 + $0x44] sm:$0x1] %v488_v47  ;;  %v481_v49 = vld [vmem:[#allocation2 + $0x34] sm:$0x1]  ;;  %v450_v50 = vsel %vm2580_vm5, 0, %v449_v48 }
  0x22   : > { %v482_v51 = vsel %vm2587_vm7, 0, %v481_v49  ;;  %451 = vst [vmem:[#allocation2 + $0x30] sm:$0x1] %v450_v50  ;;  %v2227_v52 = vld [vmem:[%s3259_s4 + $0x8] sm:$0xf] }
  0x23   : > { %483 = vst [vmem:[#allocation2 + $0x34] sm:$0x1] %v482_v51  ;;  %v2202_v53 = vld [vmem:[%s3259_s4 + $0x4] sm:$0xf]  ;;  %2478 = vmatprep.subr.msk.bf16.mxu0 %vm815_vm9, %v2227_v52  ;;  %v1054_v54 = vsel %vm815_vm9, %v2227_v52, 0 }
  0x24   : > { %2476 = vmatprep.subr.msk.bf16.mxu1 %vm815_vm9, %v2202_v53  ;;  %v817_v55 = vsel %vm815_vm9, %v2202_v53, 0  ;;  %2406 = vmatpush3.bf16.msra.mxu0 %v1054_v54  ;;  %v2650_v56 = vld [vmem:[%s3259_s4] sm:$0xf]  ;;  %v2657_v57 = vld [vmem:[%s3259_s4 + $0x10] sm:$0xf] }
  0x25   : > { %2386 = vmatpush3.bf16.msra.mxu1 %v817_v55  ;;  %2480 = vmatprep.subr.msk.bf16.mxu0 %vm815_vm9, %v2657_v57  ;;  %v2661_v58 = vld [vmem:[#allocation2] sm:$0xf]  ;;  %v2670_v0 = vld [vmem:[#allocation2 + $0x4] sm:$0x1]  ;;  %v620_v37 = vld [vmem:[#allocation2 + $0x18] sm:$0xf] }
  0x26   : > { %2477 = vmatprep.subr.msk.bf16.mxu1 %vm815_vm9, %v2650_v56  ;;  %v677_v59 = vshrl.u32 %v2661_v58, 16  ;;  %v680_v60 = vshll.u32 %v2661_v58, 16  ;;  %v2668_v61 = vld [vmem:[%s3257_s2] ss:$0 sm:$0xff]  ;;  %v2219_v5 = vrot.slane %v2661_v58, 9  ;;  %v997_v6 = vrot.slane %v2670_v0, 5 }
  0x27   : > { %v2675_v2 = vld [vmem:[%s3258_s3] ss:$0 sm:$0xff]  ;;  %v686_v28 = vshll.u32 %v2670_v0, 16  ;;  %v623_v38 = vld [vmem:[#allocation2 + $0x1c] sm:$0x1] }
  0x28   : > { %v679_v62 = vrot.slane %v677_v59, 4  ;;  %v682_v63 = vrot.slane %v680_v60, 5  ;;  %v2690_v18 = vsel %vm2684_vm14, %v2219_v5, %v997_v6  ;;  %v608_v46 = vld [vmem:[#allocation2 + $0x8] sm:$0xf]  ;;  %v611_v47 = vld [vmem:[#allocation2 + $0xc] sm:$0x1] }
  0x29   : > { %v629_v5 = vld [vmem:[#allocation2 + $0x24] sm:$0x1]  ;;  %vm673_vm7 = vsmask.f32 3328  ;;  %vm674_vm10 = vsmask.f32 7440 }
  0x2a   : > { %v683_v7 = vor.u32 %v682_v63, %v679_v62 }
  0x2c   : > { %v2692_v19 = vrot.slane %v683_v7, 4 }
  0xd8   : > { %v2379_v1 = vpop.f32.mrf.mxu0 }
  0xd9   : > { %v368_v3 = vadd.f32 %v2379_v1, %v2668_v61 }
  0xda   : > { %v359_v4 = vpop.f32.mrf.mxu0 }
  0xdb   : > { %vm392_vm12 = vcmp.gt.f32.partialorder %v368_v3, 0.0  ;;  %v407_v9 = vmul.f32 %v2675_v2, %v368_v3  ;;  %v360_v10 = vadd.f32 %v2668_v61, %v359_v4  ;;  %v626_v4 = vld [vmem:[#allocation2 + $0x20] sm:$0xf] }
  0xdc   : > { %v2380_v11 = vpop.f32.mrf.mxu0 }
  0xdd   : > { %v415_v12 = vsel %vm392_vm12, %v368_v3, %v407_v9  ;;  %vm390_vm13 = vcmp.gt.f32.partialorder %v360_v10, 0.0  ;;  %v405_v13 = vmul.f32 %v2675_v2, %v360_v10  ;;  %v371_v14 = vadd.f32 %v2380_v11, %v2668_v61 }
  0xde   : > { %v2313_v16 = vpack.c.bf16 %v415_v12, %v415_v12  ;;  %v362_v17 = vpop.f32.mrf.mxu0 }
  0xdf   : > { %v413_v20 = vsel %vm390_vm13, %v360_v10, %v405_v13  ;;  %vm393_vm15 = vcmp.gt.f32.partialorder %v371_v14, 0.0  ;;  %v408_v21 = vmul.f32 %v2675_v2, %v371_v14  ;;  %v363_v22 = vadd.f32 %v2668_v61, %v362_v17 }
  0xe0   : > { %v542_v23 = vshrl.u32 %v2313_v16, 16  ;;  %v545_v24 = vshll.u32 %v2313_v16, 16  ;;  %v2311_v26 = vpack.c.bf16 %v413_v20, %v413_v20  ;;  %v2383_v27 = vpop.f32.mrf.mxu0  ;;  %v617_v16 = vld [vmem:[#allocation2 + $0x14] sm:$0x1] }
  0xe1   : > { %v416_v29 = vsel %vm393_vm15, %v371_v14, %v408_v21  ;;  %vm391_vm0 = vcmp.gt.f32.partialorder %v363_v22, 0.0  ;;  %v406_v30 = vmul.f32 %v2675_v2, %v363_v22  ;;  %v384_v31 = vadd.f32 %v2383_v27, %v2668_v61  ;;  %v614_v14 = vld [vmem:[#allocation2 + $0x10] sm:$0xf] }
  0xe2   : > { %v544_v32 = vrot.slane %v542_v23, 7  ;;  %v526_v33 = vshrl.u32 %v2311_v26, 16  ;;  %v529_v34 = vshll.u32 %v2311_v26, 16  ;;  %v2314_v35 = vpack.c.bf16 %v416_v29, %v416_v29  ;;  %v375_v36 = vpop.f32.mrf.mxu0 }
  0xe3   : > { %v414_v39 = vsel %vm391_vm0, %v363_v22, %v406_v30  ;;  %vm396_vm1 = vcmp.gt.f32.partialorder %v384_v31, 0.0  ;;  %v411_v40 = vmul.f32 %v2675_v2, %v384_v31  ;;  %v376_v41 = vadd.f32 %v2668_v61, %v375_v36 }
  0xe4   : > { %v547_v42 = vor.u32 %v545_v24, %v544_v32  ;;  %v548_v43 = vrot.slane %v544_v32, 4  ;;  %v528_v44 = vrot.slane %v526_v33, 7  ;;  %v550_v45 = vshrl.u32 %v2314_v35, 16  ;;  %v2384_v51 = vpop.f32.mrf.mxu0 }
  0xe5   : > { %v553_v48 = vshll.u32 %v2314_v35, 16  ;;  %v2312_v49 = vpack.c.bf16 %v414_v39, %v414_v39  ;;  %v419_v50 = vsel %vm396_vm1, %v384_v31, %v411_v40  ;;  %vm394_vm2 = vcmp.gt.f32.partialorder %v376_v41, 0.0  ;;  %v647_v35 = vld [vmem:[#allocation2 + $0x3c] sm:$0x1] }
  0xe6   : > { %v621_v52 = vsel %vm2605_vm8, %v547_v42, %v620_v37  ;;  %v624_v53 = vsel %vm2580_vm5, %v548_v43, %v623_v38  ;;  %v531_v54 = vor.u32 %v529_v34, %v528_v44  ;;  %v532_v55 = vrot.slane %v528_v44, 4  ;;  %v378_v13 = vpop.f32.mrf.mxu0  ;;  %v644_v34 = vld [vmem:[#allocation2 + $0x38] sm:$0xf]  ;;  %v632_v42 = vld [vmem:[#allocation2 + $0x28] sm:$0xf] }
  0xe7   : > { %622 = vst [vmem:[#allocation2 + $0x18] sm:$0xf] %v621_v52  ;;  %625 = vst [vmem:[#allocation2 + $0x1c] sm:$0x1] %v624_v53  ;;  %v552_v59 = vrot.slane %v550_v45, 7  ;;  %v534_v60 = vshrl.u32 %v2312_v49, 16  ;;  %v2317_v63 = vpack.c.bf16 %v419_v50, %v419_v50  ;;  %v409_v6 = vmul.f32 %v2675_v2, %v376_v41 }
  0xe8   : > { %v537_v62 = vshll.u32 %v2312_v49, 16  ;;  %v609_v1 = vsel %vm2605_vm8, %v531_v54, %v608_v46  ;;  %v612_v3 = vsel %vm2580_vm5, %v532_v55, %v611_v47  ;;  %v387_v7 = vadd.f32 %v2384_v51, %v2668_v61 }
  0xe9   : > { %610 = vst [vmem:[#allocation2 + $0x8] sm:$0xf] %v609_v1  ;;  %613 = vst [vmem:[#allocation2 + $0xc] sm:$0x1] %v612_v3  ;;  %v555_v9 = vor.u32 %v553_v48, %v552_v59  ;;  %v556_v10 = vrot.slane %v552_v59, 4  ;;  %v536_v11 = vrot.slane %v534_v60, 7  ;;  %v417_v20 = vsel %vm394_vm2, %v376_v41, %v409_v6 }
  0xea   : > { %v574_v12 = vshrl.u32 %v2317_v63, 16  ;;  %v577_v17 = vshll.u32 %v2317_v63, 16  ;;  %vm397_vm3 = vcmp.gt.f32.partialorder %v387_v7, 0.0  ;;  %v412_v21 = vmul.f32 %v2675_v2, %v387_v7  ;;  %v650_v60 = vld [vmem:[#allocation2 + $0x40] sm:$0xf] }
  0xeb   : > { %v627_v22 = vsel %vm2605_vm8, %v555_v9, %v626_v4  ;;  %v630_v23 = vsel %vm2580_vm5, %v556_v10, %v629_v5  ;;  %v539_v24 = vor.u32 %v537_v62, %v536_v11  ;;  %v540_v26 = vrot.slane %v536_v11, 4  ;;  %v653_v62 = vld [vmem:[#allocation2 + $0x44] sm:$0x1] }
  0xec   : > { %628 = vst [vmem:[#allocation2 + $0x20] sm:$0xf] %v627_v22  ;;  %631 = vst [vmem:[#allocation2 + $0x24] sm:$0x1] %v630_v23  ;;  %v576_v27 = vrot.slane %v574_v12, 7  ;;  %v2315_v29 = vpack.c.bf16 %v417_v20, %v417_v20  ;;  %v420_v30 = vsel %vm397_vm3, %v387_v7, %v412_v21  ;;  %v379_v31 = vadd.f32 %v2668_v61, %v378_v13 }
  0xed   : > { %v615_v32 = vsel %vm2605_vm8, %v539_v24, %v614_v14  ;;  %v618_v33 = vsel %vm2580_vm5, %v540_v26, %v617_v16  ;;  %v2318_v36 = vpack.c.bf16 %v420_v30, %v420_v30  ;;  %v2724_v37 = vrot.slane %v686_v28, 5  ;;  %v638_v24 = vld [vmem:[#allocation2 + $0x30] sm:$0xf]  ;;  %v641_v30 = vld [vmem:[#allocation2 + $0x34] sm:$0x1] }
  0xee   : > { %616 = vst [vmem:[#allocation2 + $0x10] sm:$0xf] %v615_v32  ;;  %619 = vst [vmem:[#allocation2 + $0x14] sm:$0x1] %v618_v33  ;;  %v579_v38 = vor.u32 %v577_v17, %v576_v27  ;;  %v580_v39 = vrot.slane %v576_v27, 4  ;;  %v558_v40 = vshrl.u32 %v2315_v29, 16  ;;  %v410_v45 = vmul.f32 %v2675_v2, %v379_v31 }
  0xef   : > { %v561_v61 = vshll.u32 %v2315_v29, 16  ;;  %v2726_v41 = vld [vmem:[#allocation2 + $0x18] sm:$0xf]  ;;  %v582_v43 = vshrl.u32 %v2318_v36, 16  ;;  %v585_v44 = vshll.u32 %v2318_v36, 16  ;;  %vm395_vm6 = vcmp.gt.f32.partialorder %v379_v31, 0.0 }
  0xf0   : > { %v2729_v46 = vld [vmem:[#allocation2 + $0x1c] sm:$0x1]  ;;  %v645_v0 = vsel %vm2605_vm8, %v579_v38, %v644_v34  ;;  %v648_v28 = vsel %vm2580_vm5, %v580_v39, %v647_v35  ;;  %v560_v47 = vrot.slane %v558_v40, 7  ;;  %v2735_v48 = vld [vmem:[#allocation2 + $0x8] sm:$0xf]  ;;  %v2222_v50 = vrot.slane %v2726_v41, 9 }
  0xf1   : > { %v2737_v49 = vld [vmem:[#allocation2 + $0xc] sm:$0x1]  ;;  %646 = vst [vmem:[#allocation2 + $0x38] sm:$0xf] %v645_v0  ;;  %649 = vst [vmem:[#allocation2 + $0x3c] sm:$0x1] %v648_v28  ;;  %v418_v52 = vsel %vm395_vm6, %v379_v31, %v410_v45 }
  0xf2   : > { %v635_v2 = vld [vmem:[#allocation2 + $0x2c] sm:$0x1]  ;;  %v584_v51 = vrot.slane %v582_v43, 7  ;;  %v2220_v53 = vrot.slane %v2735_v48, 9  ;;  %v1001_v54 = vrot.slane %v2737_v49, 5  ;;  %v563_v55 = vor.u32 %v561_v61, %v560_v47 }
  0xf3   : > { %v564_v59 = vrot.slane %v560_v47, 4  ;;  %v2316_v63 = vpack.c.bf16 %v418_v52, %v418_v52  ;;  %v1009_v1 = vrot.slane %v2729_v46, 5  ;;  %v691_v6 = vshrl.u32 %v2735_v48, 16  ;;  %v2750_v12 = vld [vmem:[#allocation2 + $0x20] sm:$0xf] }
  0xf4   : > { %v587_v3 = vor.u32 %v585_v44, %v584_v51  ;;  %v588_v4 = vrot.slane %v584_v51, 4  ;;  %v1002_v5 = vsel %vm2684_vm14, %v2220_v53, %v1001_v54  ;;  %v633_v7 = vsel %vm2605_vm8, %v563_v55, %v632_v42  ;;  %v2752_v13 = vld [vmem:[#allocation2 + $0x24] sm:$0x1]  ;;  %v2788_v47 = vld [vmem:[%s3259_s4 + $0x18] sm:$0xf] }
  0xf5   : > { %v636_v9 = vsel %vm2580_vm5, %v564_v59, %v635_v2  ;;  %v566_v10 = vshrl.u32 %v2316_v63, 16  ;;  %v569_v11 = vshll.u32 %v2316_v63, 16  ;;  %634 = vst [vmem:[#allocation2 + $0x28] sm:$0xf] %v633_v7  ;;  %v2228_v17 = vcombine.low %v2690_v18, %v1002_v5  ;;  %v2759_v20 = vld [vmem:[#allocation2 + $0x10] sm:$0xf] }
  0xf6   : > { %637 = vst [vmem:[#allocation2 + $0x2c] sm:$0x1] %v636_v9  ;;  %v651_v14 = vsel %vm2605_vm8, %v587_v3, %v650_v60  ;;  %v654_v16 = vsel %vm2580_vm5, %v588_v4, %v653_v62  ;;  %v661_v21 = vld [vmem:[#allocation2 + $0x14] sm:$0x1]  ;;  %v1010_v22 = vsel %vm2684_vm14, %v2222_v50, %v1009_v1  ;;  %v2221_v26 = vrot.slane %v2759_v20, 9 }
  0xf7   : > { %652 = vst [vmem:[#allocation2 + $0x40] sm:$0xf] %v651_v14  ;;  %655 = vst [vmem:[#allocation2 + $0x44] sm:$0x1] %v654_v16  ;;  %v568_v23 = vrot.slane %v566_v10, 7  ;;  %v1005_v27 = vrot.slane %v661_v21, 5  ;;  %2407 = vmatprep.mubr.msk.bf16.mxu0 %vm802_vm4, %v2228_v17 }
  0xf8   : > { %v693_v29 = vrot.slane %v691_v6, 4  ;;  %v694_v31 = vshll.u32 %v2735_v48, 16  ;;  %v700_v18 = vshll.u32 %v2737_v49, 16  ;;  %v2223_v32 = vrot.slane %v2750_v12, 9  ;;  %v2783_v28 = vld [vmem:[#allocation2 + $0x38] sm:$0xf] }
  0xf9   : > { %v1013_v33 = vrot.slane %v2752_v13, 5  ;;  %v571_v34 = vor.u32 %v569_v11, %v568_v23  ;;  %v572_v35 = vrot.slane %v568_v23, 4  ;;  %v1006_v36 = vsel %vm2684_vm14, %v2221_v26, %v1005_v27  ;;  %v2799_v50 = vld [vmem:[#allocation2 + $0x3c] sm:$0x1]  ;;  %v2814_v1 = vld [vmem:[#allocation2 + $0x8] sm:$0xf] }
  0xfa   : > { %v705_v38 = vshrl.u32 %v2759_v20, 16  ;;  %v2229_v39 = vcombine.low %v1006_v36, %v1010_v22  ;;  %v696_v40 = vrot.slane %v694_v31, 5  ;;  %v2774_v61 = vsel %vm815_vm9, %v2650_v56, 0  ;;  %v2818_v5 = vld [vmem:[#allocation2 + $0xc] sm:$0x1] }
  0xfb   : > { %v1394_v42 = vsel %vm815_vm9, %v2657_v57, 0  ;;  %v639_v43 = vsel %vm2605_vm8, %v571_v34, %v638_v24  ;;  %v642_v44 = vsel %vm2580_vm5, %v572_v35, %v641_v30  ;;  %v708_v0 = vshll.u32 %v2759_v20, 16  ;;  %vm2793_vm8 = vmor %vm673_vm7, %vm674_vm10  ;;  %v2826_v10 = vld [vmem:[#allocation2 + $0x10] sm:$0xf]  ;;  %v2828_v22 = vld [vmem:[#allocation2 + $0x14] sm:$0x1] }
  0xfc   : > { %v707_v45 = vrot.slane %v705_v38, 4  ;;  %640 = vst [vmem:[#allocation2 + $0x30] sm:$0xf] %v639_v43  ;;  %643 = vst [vmem:[#allocation2 + $0x34] sm:$0x1] %v642_v44  ;;  %2408 = vmatmul.mubr.msk.bf16.vlgmr.msra.gmra.mxu0 %vm802_vm4, %v2229_v39  ;;  %v697_v8 = vor.u32 %v696_v40, %v693_v29  ;;  %v714_v56 = vshll.u32 %v661_v21, 16  ;;  %v689_v2 = vsel %vm2793_vm8, %v2692_v19, %v2724_v37 }
  0xfd   : > { %v719_v57 = vshrl.u32 %v2726_v41, 16  ;;  %v722_v49 = vshll.u32 %v2726_v41, 16  ;;  %v702_v51 = vrot.slane %v700_v18, 5  ;;  %v2805_v52 = vld [vmem:[#allocation2 + $0x28] sm:$0xf]  ;;  %v1014_v54 = vsel %vm2684_vm14, %v2223_v32, %v1013_v33  ;;  %2426 = vmatpush3.bf16.msra.mxu0 %v1394_v42 }
  0xfe   : > { %v2807_v53 = vld [vmem:[#allocation2 + $0x2c] sm:$0x1]  ;;  %v710_v55 = vrot.slane %v708_v0, 5  ;;  %v698_v59 = vrot.slane %v697_v8, 4  ;;  %v2224_v60 = vrot.slane %v2805_v52, 9  ;;  %v728_v63 = vshll.u32 %v2729_v46, 16  ;;  %2482 = vmatprep.subr.msk.bf16.mxu0 %vm815_vm9, %v2788_v47 }
  0xff   : > { %v1017_v62 = vrot.slane %v2807_v53, 5  ;;  %v716_v37 = vrot.slane %v714_v56, 5  ;;  %v721_v3 = vrot.slane %v719_v57, 4  ;;  %v724_v4 = vrot.slane %v722_v49, 5  ;;  %v2854_v49 = vld [vmem:[%s3259_s4 + $0xc] sm:$0xf] }
 0x100   : > { %v711_v19 = vor.u32 %v710_v55, %v707_v45  ;;  %v703_v6 = vsel %vm2793_vm8, %v698_v59, %v702_v51  ;;  %v2226_v9 = vrot.slane %v2783_v28, 9  ;;  %v1025_v46 = vrot.slane %v2799_v50, 5 }
 0x101   : > { %v1018_v7 = vsel %vm2684_vm14, %v2224_v60, %v1017_v62  ;;  %v2203_v11 = vcombine.low %v689_v2, %v703_v6  ;;  %v725_v17 = vor.u32 %v724_v4, %v721_v3  ;;  %v730_v21 = vrot.slane %v728_v63, 5 }
 0x102   : > { %v2230_v14 = vcombine.low %v1014_v54, %v1018_v7  ;;  %v712_v16 = vrot.slane %v711_v19, 4  ;;  %v1256_v23 = vshrl.u32 %v2814_v1, 16  ;;  %v1259_v24 = vshll.u32 %v2814_v1, 16 }
 0x103   : > { %v1265_v26 = vshll.u32 %v2818_v5, 16  ;;  %2387 = vmatprep.mubr.msk.bf16.mxu1 %vm802_vm4, %v2203_v11  ;;  %v726_v29 = vrot.slane %v725_v17, 4  ;;  %v2837_v30 = vld [vmem:[#allocation2 + $0x30] sm:$0xf]  ;;  %v669_v31 = vld [vmem:[#allocation2 + $0x34] sm:$0x1]  ;;  %v1026_v38 = vsel %vm2684_vm14, %v2226_v9, %v1025_v46 }
 0x104   : > { %2411 = vmatprep.mubr.msk.bf16.mxu0 %vm802_vm4, %v2230_v14  ;;  %v717_v27 = vsel %vm2793_vm8, %v712_v16, %v716_v37  ;;  %v1270_v18 = vshrl.u32 %v2826_v10, 16  ;;  %v2225_v32 = vrot.slane %v2837_v30, 9  ;;  %v1021_v33 = vrot.slane %v669_v31, 5 }
 0x105   : > { %v1258_v34 = vrot.slane %v1256_v23, 4  ;;  %v1261_v35 = vrot.slane %v1259_v24, 5  ;;  %v731_v36 = vsel %vm2793_vm8, %v726_v29, %v730_v21  ;;  %v1273_v40 = vshll.u32 %v2826_v10, 16  ;;  %v2872_v23 = vld [vmem:[#allocation2 + $0x18] sm:$0xf] }
 0x106   : > { %v1272_v39 = vrot.slane %v1270_v18, 4  ;;  %v2204_v42 = vcombine.low %v717_v27, %v731_v36  ;;  %v1022_v43 = vsel %vm2684_vm14, %v2225_v32, %v1021_v33  ;;  %v1279_v45 = vshll.u32 %v2828_v22, 16  ;;  %v2874_v24 = vld [vmem:[#allocation2 + $0x1c] sm:$0x1]  ;;  %v2876_v32 = vld [vmem:[#allocation2 + $0x20] sm:$0xf] }
 0x107   : > { %v1262_v44 = vor.u32 %v1261_v35, %v1258_v34  ;;  %v2231_v0 = vcombine.low %v1022_v43, %v1026_v38  ;;  %v1275_v8 = vrot.slane %v1273_v40, 5  ;;  %v733_v56 = vshrl.u32 %v2750_v12, 16 }
 0x108   : > { %v736_v57 = vshll.u32 %v2750_v12, 16  ;;  %2388 = vmatmul.mubr.msk.bf16.vlgmr.msra.gmra.mxu1 %vm802_vm4, %v2204_v42  ;;  %v1267_v51 = vrot.slane %v1265_v26, 5  ;;  %v742_v54 = vshll.u32 %v2752_v13, 16  ;;  %v747_v55 = vshrl.u32 %v2805_v52, 16 }
 0x109   : > { %v1263_v2 = vrot.slane %v1262_v44, 4  ;;  %2396 = vmatpush3.bf16.msra.mxu1 %v2774_v61  ;;  %2412 = vmatmul.mubr.msk.bf16.gmra.mxu0 %vm802_vm4, %v2231_v0  ;;  %v1276_v59 = vor.u32 %v1275_v8, %v1272_v39  ;;  %v735_v60 = vrot.slane %v733_v56, 4  ;;  %v750_v63 = vshll.u32 %v2805_v52, 16  ;;  %v2889_v0 = vld [vmem:[#allocation2 + $0x28] sm:$0xf] }
 0x10a   : > { %v738_v62 = vrot.slane %v736_v57, 5  ;;  %v1281_v37 = vrot.slane %v1279_v45, 5  ;;  %v749_v3 = vrot.slane %v747_v55, 4  ;;  %v756_v4 = vshll.u32 %v2807_v53, 16  ;;  %2479 = vmatprep.subr.msk.bf16.mxu1 %vm815_vm9, %v2854_v49  ;;  %v2891_v57 = vld [vmem:[#allocation2 + $0x24] sm:$0x1] }
 0x10b   : > { %v1268_v19 = vsel %vm2793_vm8, %v1263_v2, %v1267_v51  ;;  %v1277_v13 = vrot.slane %v1276_v59, 4  ;;  %v752_v61 = vrot.slane %v750_v63, 5  ;;  %v761_v7 = vshrl.u32 %v2837_v30, 16  ;;  %v2894_v59 = vld [vmem:[#allocation2 + $0x30] sm:$0xf] }
 0x10c   : > { %v739_v6 = vor.u32 %v738_v62, %v735_v60  ;;  %v744_v9 = vrot.slane %v742_v54, 5  ;;  %v764_v46 = vshll.u32 %v2837_v30, 16  ;;  %v770_v11 = vshll.u32 %v669_v31, 16 }
 0x10d   : > { %v775_v14 = vshrl.u32 %v2783_v28, 16  ;;  %v1282_v16 = vsel %vm2793_vm8, %v1277_v13, %v1281_v37  ;;  %v753_v21 = vor.u32 %v752_v61, %v749_v3  ;;  %v763_v53 = vrot.slane %v761_v7, 4  ;;  %v2901_v13 = vld [vmem:[#allocation2 + $0x2c] sm:$0x1] }
 0x10e   : > { %v740_v17 = vrot.slane %v739_v6, 4  ;;  %v2246_v26 = vcombine.low %v1268_v19, %v1282_v16  ;;  %v758_v27 = vrot.slane %v756_v4, 5  ;;  %v766_v29 = vrot.slane %v764_v46, 5 }
 0x10f   : > { %v772_v18 = vrot.slane %v770_v11, 5  ;;  %v754_v33 = vrot.slane %v753_v21, 4  ;;  %v777_v34 = vrot.slane %v775_v14, 4  ;;  %v778_v35 = vshll.u32 %v2783_v28, 16  ;;  %v2907_v11 = vld [vmem:[#allocation2 + $0x38] sm:$0xf] }
 0x110   : > { %v745_v31 = vsel %vm2793_vm8, %v740_v17, %v744_v9  ;;  %2427 = vmatprep.mubr.msk.bf16.mxu0 %vm802_vm4, %v2246_v26  ;;  %v767_v36 = vor.u32 %v766_v29, %v763_v53  ;;  %v784_v38 = vshll.u32 %v2799_v50, 16  ;;  %v1284_v39 = vshrl.u32 %v2872_v23, 16  ;;  %v2911_v21 = vld [vmem:[#allocation2 + $0x34] sm:$0x1]  ;;  %v2913_v26 = vld [vmem:[#allocation2 + $0x40] sm:$0xf] }
 0x111   : > { %v1287_v40 = vshll.u32 %v2872_v23, 16  ;;  %v759_v42 = vsel %vm2793_vm8, %v754_v33, %v758_v27  ;;  %v780_v43 = vrot.slane %v778_v35, 5  ;;  %v1293_v44 = vshll.u32 %v2874_v24, 16 }
 0x112   : > { %v1298_v45 = vshrl.u32 %v2876_v32, 16  ;;  %v2205_v8 = vcombine.low %v745_v31, %v759_v42  ;;  %v768_v56 = vrot.slane %v767_v36, 4  ;;  %v1286_v2 = vrot.slane %v1284_v39, 4 }
 0x113   : > { %v1289_v50 = vrot.slane %v1287_v40, 5  ;;  %v781_v51 = vor.u32 %v780_v43, %v777_v34  ;;  %v1301_v55 = vshll.u32 %v2876_v32, 16  ;;  %v786_v62 = vrot.slane %v784_v38, 5 }
 0x114   : > { %v1300_v54 = vrot.slane %v1298_v45, 4  ;;  %2391 = vmatprep.mubr.msk.bf16.mxu1 %vm802_vm4, %v2205_v8  ;;  %v773_v60 = vsel %vm2793_vm8, %v768_v56, %v772_v18  ;;  %v1312_v19 = vshrl.u32 %v2889_v0, 16  ;;  %v1307_v4 = vshll.u32 %v2891_v57, 16 }
 0x115   : > { %v1290_v63 = vor.u32 %v1289_v50, %v1286_v2  ;;  %v782_v37 = vrot.slane %v781_v51, 4  ;;  %v1303_v3 = vrot.slane %v1301_v55, 5  ;;  %v1315_v6 = vshll.u32 %v2889_v0, 16  ;;  %v2929_v2 = vld [vmem:[#allocation2 + $0x3c] sm:$0x1] }
 0x116   : > { %v2211_v61 = vcombine.low %v2661_v58, %v2735_v48  ;;  %v1295_v7 = vrot.slane %v1293_v44, 5  ;;  %v1314_v9 = vrot.slane %v1312_v19, 4  ;;  %v1326_v46 = vshrl.u32 %v2894_v59, 16  ;;  %v2931_v50 = vld [vmem:[#allocation2 + $0x44] sm:$0x1] }
 0x117   : > { %v787_v14 = vsel %vm2793_vm8, %v782_v37, %v786_v62  ;;  %v1291_v16 = vrot.slane %v1290_v63, 4  ;;  %v1304_v17 = vor.u32 %v1303_v3, %v1300_v54  ;;  %v1317_v53 = vrot.slane %v1315_v6, 5 }
 0x118   : > { %v2206_v27 = vcombine.low %v773_v60, %v787_v14  ;;  %v1321_v29 = vshll.u32 %v2901_v13, 16  ;;  %v1328_v58 = vrot.slane %v1326_v46, 4  ;;  %v1329_v48 = vshll.u32 %v2894_v59, 16  ;;  %v2297_v60 = vld [vmem:[%s3259_s4 + $0x20] sm:$0xf] }
 0x119   : > { %v1305_v18 = vrot.slane %v1304_v17, 4  ;;  %v1309_v31 = vrot.slane %v1307_v4, 5  ;;  %v1318_v33 = vor.u32 %v1317_v53, %v1314_v9  ;;  %v1340_v34 = vshrl.u32 %v2907_v11, 16  ;;  %v2262_v17 = vld [vmem:[%s3259_s4 + $0x14] sm:$0xf] }
 0x11a   : > { %2392 = vmatmul.mubr.msk.bf16.gmra.mxu1 %vm802_vm4, %v2206_v27  ;;  %v1331_v35 = vrot.slane %v1329_v48, 5  ;;  %v1335_v36 = vshll.u32 %v2911_v21, 16  ;;  %v1343_v38 = vshll.u32 %v2907_v11, 16  ;;  %v1354_v39 = vshrl.u32 %v2913_v26, 16  ;;  %v2957_v27 = vld [vmem:[#allocation2 + $0x10] sm:$0xf] }
 0x11b   : > { %2397 = vmatprep.mubr.msk.bf16.mxu1 %vm802_vm4, %v2211_v61  ;;  %v1296_v40 = vsel %vm2793_vm8, %v1291_v16, %v1295_v7  ;;  %v1310_v42 = vsel %vm2793_vm8, %v1305_v18, %v1309_v31  ;;  %v1342_v43 = vrot.slane %v1340_v34, 4  ;;  %v1663_v44 = vsel %vm815_vm9, %v2788_v47, 0  ;;  %v2968_v18 = vld [vmem:[#allocation2 + $0x48] sm:$0xf]  ;;  %v2970_v31 = vld [vmem:[#allocation2 + $0x4c] sm:$0x1] }
 0x11c   : > { %v2247_v45 = vcombine.low %v1296_v40, %v1310_v42  ;;  %v1319_v8 = vrot.slane %v1318_v33, 4  ;;  %v1332_v56 = vor.u32 %v1331_v35, %v1328_v58  ;;  %v1345_v51 = vrot.slane %v1343_v38, 5  ;;  %v2982_v38 = vld [vmem:[#allocation2 + $0x28] sm:$0xf] }
 0x11d   : > { %v1356_v54 = vrot.slane %v1354_v39, 4  ;;  %v1357_v55 = vshll.u32 %v2913_v26, 16  ;;  %v1323_v62 = vrot.slane %v1321_v29, 5  ;;  %v1337_v47 = vrot.slane %v1335_v36, 5  ;;  %v2984_v39 = vld [vmem:[#allocation2 + $0x30] sm:$0xf] }
 0x11e   : > { %2428 = vmatmul.mubr.msk.bf16.vlgmr.msra.gmra.mxu0 %vm802_vm4, %v2247_v45  ;;  %v1333_v63 = vrot.slane %v1332_v56, 4  ;;  %v1346_v19 = vor.u32 %v1345_v51, %v1342_v43  ;;  %v1349_v37 = vshll.u32 %v2929_v2, 16  ;;  %v1363_v4 = vshll.u32 %v2931_v50, 16  ;;  %v2993_v43 = vld [vmem:[#allocation2 + $0x14] sm:$0x1] }
 0x11f   : > { %v1359_v3 = vrot.slane %v1357_v55, 5  ;;  %2446 = vmatpush3.bf16.msra.mxu0 %v1663_v44  ;;  %v1324_v6 = vsel %vm2793_vm8, %v1319_v8, %v1323_v62  ;;  %v2212_v7 = vcombine.low %v2759_v20, %v2726_v41  ;;  %v1180_v9 = vsel %vm815_vm9, %v2854_v49, 0  ;;  %v2997_v45 = vld [vmem:[#allocation2 + $0x38] sm:$0xf] }
 0x120   : > { %v1338_v61 = vsel %vm2793_vm8, %v1333_v63, %v1337_v47  ;;  %2484 = vmatprep.subr.msk.bf16.mxu0 %vm815_vm9, %v2297_v60  ;;  %v1347_v14 = vrot.slane %v1346_v19, 4  ;;  %v2213_v53 = vcombine.low %v2750_v12, %v2805_v52  ;;  %v1351_v41 = vrot.slane %v1349_v37, 5  ;;  %v2964_v12 = vld [vmem:[#allocation2 + $0x18] sm:$0xf]  ;;  %v3009_v63 = vld [vmem:[#allocation2 + $0x1c] sm:$0x1] }
 0x121   : > { %v2248_v46 = vcombine.low %v1324_v6, %v1338_v61  ;;  %v1360_v16 = vor.u32 %v1359_v3, %v1356_v54  ;;  %v1365_v49 = vrot.slane %v1363_v4, 5  ;;  %v2272_v52 = vcombine.low %v2957_v27, %v2964_v12 }
 0x122   : > { %2398 = vmatmul.mubr.msk.bf16.vlgmr.msra.gmra.mxu1 %vm802_vm4, %v2212_v7  ;;  %v1352_v29 = vsel %vm2793_vm8, %v1347_v14, %v1351_v41  ;;  %v2214_v33 = vcombine.low %v2837_v30, %v2783_v28  ;;  %v2237_v34 = vcombine.low %v2814_v1, %v2826_v10  ;;  %v2296_v35 = vrot.slane %v2968_v18, 9  ;;  %v2280_v28 = vld [vmem:[%s3259_s4 + $0x1c] sm:$0xf]  ;;  %v2989_v30 = vld [vmem:[#allocation2 + $0x20] sm:$0xf] }
 0x123   : > { %2431 = vmatprep.mubr.msk.bf16.mxu0 %vm802_vm4, %v2248_v46  ;;  %2416 = vmatpush3.bf16.msra.mxu1 %v1180_v9  ;;  %v1361_v20 = vrot.slane %v1360_v16, 4  ;;  %v1990_v36 = vrot.slane %v2970_v31, 5  ;;  %v1837_v40 = vshrl.u32 %v2968_v18, 16  ;;  %v1840_v42 = vshll.u32 %v2968_v18, 16  ;;  %v3026_v9 = vld [vmem:[#allocation2 + $0x2c] sm:$0x1] }
 0x124   : > { %2401 = vmatprep.mubr.msk.bf16.mxu1 %vm802_vm4, %v2213_v53  ;;  %2481 = vmatprep.subr.msk.bf16.mxu1 %vm815_vm9, %v2262_v17  ;;  %v2273_v44 = vcombine.low %v2989_v30, %v2982_v38  ;;  %v1536_v8 = vsel %vm815_vm9, %v2262_v17, 0  ;;  %v2019_v56 = vsel %vm815_vm9, %v2297_v60, 0  ;;  %v1739_v54 = vshrl.u32 %v2957_v27, 16  ;;  %v3031_v16 = vld [vmem:[#allocation2 + $0x40] sm:$0xf] }
 0x125   : > { %v1366_v58 = vsel %vm2793_vm8, %v1361_v20, %v1365_v49  ;;  %v3003_v51 = vsel %vm2684_vm14, %v2296_v35, %v1990_v36  ;;  %v1742_v55 = vshll.u32 %v2957_v27, 16  ;;  %v2274_v62 = vcombine.low %v2984_v39, %v2997_v45  ;;  %v3040_v49 = vld [vmem:[#allocation2 + $0x24] sm:$0x1] }
 0x126   : > { %v2249_v48 = vcombine.low %v1352_v29, %v1366_v58  ;;  %v3012_v47 = vsel %vm815_vm9, %v2280_v28, 0  ;;  %v1753_v19 = vshrl.u32 %v2964_v12, 16  ;;  %v2238_v60 = vcombine.low %v2872_v23, %v2876_v32 }
 0x127   : > { %v2289_v37 = vrot.slane %v2957_v27, 9  ;;  %v1962_v3 = vrot.slane %v2993_v43, 5  ;;  %v1756_v4 = vshll.u32 %v2964_v12, 16  ;;  %v2239_v6 = vcombine.low %v2889_v0, %v2894_v59 }
 0x128   : > { %2432 = vmatmul.mubr.msk.bf16.gmra.mxu0 %vm802_vm4, %v2249_v48  ;;  %v2255_v61 = vrot.slane %v2826_v10, 9  ;;  %v1483_v7 = vrot.slane %v2828_v22, 5  ;;  %v1767_v46 = vshrl.u32 %v2989_v30, 16  ;;  %v1770_v14 = vshll.u32 %v2989_v30, 16 }
 0x129   : > { %2447 = vmatprep.mubr.msk.bf16.mxu0 %vm802_vm4, %v2272_v52  ;;  %v2290_v17 = vrot.slane %v2964_v12, 9  ;;  %v1966_v53 = vrot.slane %v3009_v63, 5  ;;  %v1781_v41 = vshrl.u32 %v2982_v38, 16  ;;  %v1784_v10 = vshll.u32 %v2982_v38, 16  ;;  %v3047_v52 = vld [vmem:[#allocation2 + $0x34] sm:$0x1] }
 0x12a   : > { %2402 = vmatmul.mubr.msk.bf16.gmra.mxu1 %vm802_vm4, %v2214_v33  ;;  %v2254_v22 = vrot.slane %v2814_v1, 9  ;;  %v1479_v20 = vrot.slane %v2818_v5, 5  ;;  %v1795_v27 = vshrl.u32 %v2984_v39, 16  ;;  %v1963_v29 = vsel %vm2684_vm14, %v2289_v37, %v1962_v3 }
 0x12b   : > { %2417 = vmatprep.mubr.msk.bf16.mxu1 %vm802_vm4, %v2237_v34  ;;  %v2292_v58 = vrot.slane %v2982_v38, 9  ;;  %v1974_v48 = vrot.slane %v3026_v9, 5  ;;  %v1798_v33 = vshll.u32 %v2984_v39, 16  ;;  %v1809_v1 = vshrl.u32 %v2997_v45, 16 }
 0x12c   : > { %v2275_v5 = vcombine.low %v3031_v16, %v2968_v18  ;;  %v1484_v34 = vsel %vm2684_vm14, %v2255_v61, %v1483_v7  ;;  %v1967_v35 = vsel %vm2684_vm14, %v2290_v17, %v1966_v53  ;;  %v2240_v36 = vcombine.low %v2907_v11, %v2913_v26 }
 0x12d   : > { %v1978_v37 = vrot.slane %v3047_v52, 5  ;;  %v2257_v61 = vrot.slane %v2876_v32, 9  ;;  %v1491_v7 = vrot.slane %v2891_v57, 5  ;;  %v2294_v17 = vrot.slane %v2997_v45, 9 }
 0x12e   : > { %v1741_v32 = vrot.slane %v1739_v54, 4  ;;  %v1744_v57 = vrot.slane %v1742_v55, 5  ;;  %v1755_v54 = vrot.slane %v1753_v19, 4  ;;  %v1758_v55 = vrot.slane %v1756_v4, 5 }
 0x12f   : > { %v2261_v4 = vrot.slane %v2913_v26, 9  ;;  %v1783_v26 = vrot.slane %v1781_v41, 4  ;;  %v1769_v38 = vrot.slane %v1767_v46, 4  ;;  %v1776_v15 = vshll.u32 %v3040_v49, 16 }
 0x130   : > { %2448 = vmatmul.mubr.msk.bf16.vlgmr.msra.gmra.mxu0 %vm802_vm4, %v2273_v44  ;;  %v2291_v44 = vrot.slane %v2989_v30, 9 }
 0x131   : > { %2451 = vmatprep.mubr.msk.bf16.mxu0 %vm802_vm4, %v2274_v62  ;;  %2466 = vmatpush3.bf16.msra.mxu0 %v2019_v56  ;;  %v2298_v56 = vcombine.low %v1963_v29, %v1967_v35  ;;  %v1480_v62 = vsel %vm2684_vm14, %v2254_v22, %v1479_v20  ;;  %v2256_v22 = vrot.slane %v2872_v23, 9  ;;  %v1487_v20 = vrot.slane %v2874_v24, 5 }
 0x132   : > { %2418 = vmatmul.mubr.msk.bf16.vlgmr.msra.gmra.mxu1 %vm802_vm4, %v2238_v60  ;;  %v2293_v60 = vrot.slane %v2984_v39, 9  ;;  %v2263_v3 = vcombine.low %v1480_v62, %v1484_v34  ;;  %v2259_v29 = vrot.slane %v2894_v59, 9  ;;  %v2258_v23 = vrot.slane %v2889_v0, 9 }
 0x133   : > { %2436 = vmatpush3.bf16.msra.mxu1 %v1536_v8  ;;  %2421 = vmatprep.mubr.msk.bf16.mxu1 %vm802_vm4, %v2239_v6  ;;  %v3062_v8 = vld [vmem:[#allocation2 + $0x3c] sm:$0x1]  ;;  %v1975_v6 = vsel %vm2684_vm14, %v2292_v58, %v1974_v48  ;;  %v1499_v58 = vrot.slane %v2911_v21, 5  ;;  %v3081_v48 = vld [vmem:[#allocation2 + $0x44] sm:$0x1]  ;;  %v1495_v24 = vrot.slane %v2901_v13, 5  ;;  %v1492_v21 = vsel %vm2684_vm14, %v2257_v61, %v1491_v7 }
 0x134   : > { %2483 = vmatprep.subr.msk.bf16.mxu1 %vm815_vm9, %v2280_v28  ;;  %v1970_v28 = vrot.slane %v3040_v49, 5  ;;  %v1982_v53 = vrot.slane %v3062_v8, 5  ;;  %v1979_v34 = vsel %vm2684_vm14, %v2293_v60, %v1978_v37  ;;  %v2295_v0 = vrot.slane %v3031_v16, 9 }
 0x135   : > { %v1986_v13 = vrot.slane %v3081_v48, 5  ;;  %v1745_v62 = vor.u32 %v1744_v57, %v1741_v32  ;;  %v1496_v12 = vsel %vm2684_vm14, %v2258_v23, %v1495_v24  ;;  %v1507_v60 = vrot.slane %v2931_v50, 5 }
 0x136   : > { %v1971_v59 = vsel %vm2684_vm14, %v2291_v44, %v1970_v28  ;;  %v1488_v44 = vsel %vm2684_vm14, %v2256_v22, %v1487_v20  ;;  %v1500_v28 = vsel %vm2684_vm14, %v2259_v29, %v1499_v58  ;;  %v2260_v37 = vrot.slane %v2907_v11, 9 }
 0x137   : > { %v2299_v35 = vcombine.low %v1971_v59, %v1975_v6  ;;  %v2264_v19 = vcombine.low %v1488_v44, %v1492_v21  ;;  %v1748_v6 = vshll.u32 %v2993_v43, 16  ;;  %v1759_v61 = vor.u32 %v1758_v55, %v1755_v54 }
 0x138   : > { %2452 = vmatmul.mubr.msk.bf16.gmra.mxu0 %vm802_vm4, %v2275_v5  ;;  %v1812_v5 = vshll.u32 %v2997_v45, 16  ;;  %v2265_v7 = vcombine.low %v1496_v12, %v1500_v28  ;;  %v1786_v50 = vrot.slane %v1784_v10, 5  ;;  %v1746_v11 = vrot.slane %v1745_v62, 4 }
 0x139   : > { %2467 = vmatprep.mubr.msk.bf16.mxu0 %vm802_vm4, %v2298_v56  ;;  %v1797_v43 = vrot.slane %v1795_v27, 4  ;;  %v1508_v41 = vsel %vm2684_vm14, %v2261_v4, %v1507_v60  ;;  %v1772_v10 = vrot.slane %v1770_v14, 5  ;;  %v1750_v27 = vrot.slane %v1748_v6, 5 }
 0x13a   : > { %2422 = vmatmul.mubr.msk.bf16.gmra.mxu1 %vm802_vm4, %v2240_v36  ;;  %v1983_v36 = vsel %vm2684_vm14, %v2294_v17, %v1982_v53  ;;  %v1987_v17 = vsel %vm2684_vm14, %v2295_v0, %v1986_v13  ;;  %v1800_v53 = vrot.slane %v1798_v33, 5  ;;  %v1760_v22 = vrot.slane %v1759_v61, 4 }
 0x13b   : > { %2437 = vmatprep.mubr.msk.bf16.mxu1 %vm802_vm4, %v2263_v3  ;;  %v2300_v56 = vcombine.low %v1979_v34, %v1983_v36  ;;  %v1503_v3 = vrot.slane %v2929_v2, 5  ;;  %v1762_v2 = vshll.u32 %v3009_v63, 16  ;;  %v1839_v63 = vrot.slane %v1837_v40, 4 }
 0x13c   : > { %v1811_v39 = vrot.slane %v1809_v1, 4  ;;  %v1823_v33 = vshrl.u32 %v3031_v16, 16  ;;  %v1826_v20 = vshll.u32 %v3031_v16, 16  ;;  %v2301_v29 = vcombine.low %v1987_v17, %v3003_v51 }
 0x13d   : > { %v1787_v58 = vor.u32 %v1786_v50, %v1783_v26  ;;  %v1504_v30 = vsel %vm2684_vm14, %v2260_v37, %v1503_v3  ;;  %v1751_v46 = vsel %vm2793_vm8, %v1746_v11, %v1750_v27  ;;  %v1764_v40 = vrot.slane %v1762_v2, 5 }
 0x13e   : > { %v1801_v14 = vor.u32 %v1800_v53, %v1797_v43  ;;  %v2266_v32 = vcombine.low %v1504_v30, %v1508_v41  ;;  %v1773_v57 = vor.u32 %v1772_v10, %v1769_v38  ;;  %v1790_v45 = vshll.u32 %v3026_v9, 16 }
 0x13f   : > { %v1842_v1 = vrot.slane %v1840_v42, 5  ;;  %v1765_v51 = vsel %vm2793_vm8, %v1760_v22, %v1764_v40  ;;  %v1804_v16 = vshll.u32 %v3047_v52, 16  ;;  %v1788_v23 = vrot.slane %v1787_v58, 4 }
 0x140   : > { %2468 = vmatmul.mubr.msk.bf16.vlgmr.msra.gmra.mxu0 %vm802_vm4, %v2299_v35  ;;  %v2281_v34 = vcombine.low %v1751_v46, %v1765_v51  ;;  %v1825_v24 = vrot.slane %v1823_v33, 4  ;;  %v1828_v59 = vrot.slane %v1826_v20, 5  ;;  %v1802_v9 = vrot.slane %v1801_v14, 4 }
 0x141   : > { %2471 = vmatprep.mubr.msk.bf16.mxu0 %vm802_vm4, %v2300_v56  ;;  %v1818_v18 = vshll.u32 %v3062_v8, 16  ;;  %v1774_v42 = vrot.slane %v1773_v57, 4  ;;  %v1792_v21 = vrot.slane %v1790_v45, 5  ;;  %v1806_v54 = vrot.slane %v1804_v16, 5 }
 0x142   : > { %2438 = vmatmul.mubr.msk.bf16.vlgmr.msra.gmra.mxu1 %vm802_vm4, %v2264_v19  ;;  %v1843_v35 = vor.u32 %v1842_v1, %v1839_v63  ;;  %v1778_v49 = vrot.slane %v1776_v15, 5  ;;  %v1829_v36 = vor.u32 %v1828_v59, %v1825_v24  ;;  %v1846_v0 = vshll.u32 %v2970_v31, 16 }
 0x143   : > { %2456 = vmatpush3.bf16.msra.mxu1 %v3012_v47  ;;  %2441 = vmatprep.mubr.msk.bf16.mxu1 %vm802_vm4, %v2265_v7  ;;  %v1814_v47 = vrot.slane %v1812_v5, 5  ;;  %v1793_v52 = vsel %vm2793_vm8, %v1788_v23, %v1792_v21  ;;  %v1807_v13 = vsel %vm2793_vm8, %v1802_v9, %v1806_v54  ;;  %v1820_v56 = vrot.slane %v1818_v18, 5 }
 0x144   : > { %v1779_v8 = vsel %vm2793_vm8, %v1774_v42, %v1778_v49  ;;  %v1832_v44 = vshll.u32 %v3081_v48, 16  ;;  %v1830_v12 = vrot.slane %v1829_v36, 4  ;;  %v1844_v4 = vrot.slane %v1843_v35, 4 }
 0x145   : > { %v1815_v5 = vor.u32 %v1814_v47, %v1811_v39  ;;  %v2282_v28 = vcombine.low %v1779_v8, %v1793_v52  ;;  %v1848_v60 = vrot.slane %v1846_v0, 5 }
 0x146   : > { %v1834_v31 = vrot.slane %v1832_v44, 5 }
 0x147   : > { %v1816_v55 = vrot.slane %v1815_v5, 4  ;;  %v1849_v3 = vsel %vm2793_vm8, %v1844_v4, %v1848_v60 }
 0x148   : > { %2472 = vmatmul.mubr.msk.bf16.gmra.mxu0 %vm802_vm4, %v2301_v29  ;;  %v1835_v37 = vsel %vm2793_vm8, %v1830_v12, %v1834_v31 }
 0x149   : > { %v1821_v62 = vsel %vm2793_vm8, %v1816_v55, %v1820_v56  ;;  %v2284_v48 = vcombine.low %v1835_v37, %v1849_v3 }
 0x14a   : > { %2442 = vmatmul.mubr.msk.bf16.gmra.mxu1 %vm802_vm4, %v2266_v32  ;;  %v2283_v19 = vcombine.low %v1807_v13, %v1821_v62 }
 0x14b   : > { %2457 = vmatprep.mubr.msk.bf16.mxu1 %vm802_vm4, %v2281_v34 }
 0x152   : > { %2458 = vmatmul.mubr.msk.bf16.vlgmr.msra.gmra.mxu1 %vm802_vm4, %v2282_v28 }
 0x153   : > { %2461 = vmatprep.mubr.msk.bf16.mxu1 %vm802_vm4, %v2283_v19 }
 0x15a   : > { %2462 = vmatmul.mubr.msk.bf16.gmra.mxu1 %vm802_vm4, %v2284_v48 }
 0x1bc   : > { %v2409_v6 = vpop.f32.mrf.mxu0 }
 0x1be   : > { %v1090_v61 = vpop.f32.mrf.mxu0 }
 0x1c0   : > { %v2410_v7 = vpop.f32.mrf.mxu0 }
 0x1c2   : > { %v3173_v26 = vpop.f32.mrf.mxu0 }
 0x1c8   : > { %v2389_v17 = vpop.f32.mrf.mxu1 }
 0x1c9   : > { %v3175_v11 = vpop.f32.mrf.mxu0 }
 0x1ca   : > { %v853_v50 = vpop.f32.mrf.mxu1 }
 0x1cb   : > { %v3177_v43 = vpop.f32.mrf.mxu0 }
 0x1cc   : > { %v2390_v2 = vpop.f32.mrf.mxu1 }
 0x1cd   : > { %v3179_v41 = vpop.f32.mrf.mxu0 }
 0x1ce   : > { %v856_v53 = vpop.f32.mrf.mxu1 }
 0x1cf   : > { %v3181_v38 = vpop.f32.mrf.mxu0 }
 0x1da   : > { %v2393_v25 = vpop.f32.mrf.mxu1 }
 0x1dc   : > { %v869_v10 = vpop.f32.mrf.mxu1 }
 0x1de   : > { %v2429_v63 = vpop.f32.mrf.mxu0  ;;  %v2394_v27 = vpop.f32.mrf.mxu1 }
 0x1e0   : > { %v1430_v22 = vpop.f32.mrf.mxu0  ;;  %v872_v39 = vpop.f32.mrf.mxu1 }
 0x1e2   : > { %v3183_v47 = vpop.f32.mrf.mxu0  ;;  %v2399_v33 = vpop.f32.mrf.mxu1 }
 0x1e3   : > { %v962_v52 = vadd.f32 %v2399_v33, %v2389_v17 }
 0x1e4   : > { %v3185_v20 = vpop.f32.mrf.mxu0  ;;  %v953_v29 = vpop.f32.mrf.mxu1 }
 0x1e5   : > { %v954_v13 = vadd.f32 %v953_v29, %v853_v50  ;;  %v1123_v44 = vadd.f32 %v2409_v6, %v962_v52 }
 0x1e6   : > { %v2400_v58 = vpop.f32.mrf.mxu1 }
 0x1e7   : > { %v965_v8 = vadd.f32 %v2400_v58, %v2390_v2  ;;  %v1121_v4 = vadd.f32 %v1090_v61, %v954_v13 }
 0x1e8   : > { %v3187_v30 = vpop.f32.mrf.mxu0  ;;  %v956_v46 = vpop.f32.mrf.mxu1 }
 0x1e9   : > { %v957_v19 = vadd.f32 %v956_v46, %v856_v53  ;;  %v1124_v3 = vadd.f32 %v2410_v7, %v965_v8 }
 0x1ea   : > { %v3189_v40 = vpop.f32.mrf.mxu0  ;;  %v2403_v14 = vpop.f32.mrf.mxu1 }
 0x1eb   : > { %v978_v60 = vadd.f32 %v2403_v14, %v2393_v25  ;;  %v1122_v33 = vadd.f32 %v3173_v26, %v957_v19 }
 0x1ec   : > { %v3191_v32 = vpop.f32.mrf.mxu0  ;;  %v969_v57 = vpop.f32.mrf.mxu1 }
 0x1ed   : > { %v970_v48 = vadd.f32 %v969_v57, %v869_v10  ;;  %v1127_v2 = vadd.f32 %v3175_v11, %v978_v60 }
 0x1ee   : > { %v3193_v45 = vpop.f32.mrf.mxu0  ;;  %v2404_v1 = vpop.f32.mrf.mxu1 }
 0x1ef   : > { %v981_v50 = vadd.f32 %v2404_v1, %v2394_v27  ;;  %v1125_v25 = vadd.f32 %v3177_v43, %v970_v48 }
 0x1f0   : > { %v2449_v51 = vpop.f32.mrf.mxu0  ;;  %v972_v15 = vpop.f32.mrf.mxu1 }
 0x1f1   : > { %v973_v46 = vadd.f32 %v972_v15, %v872_v39  ;;  %v1128_v26 = vadd.f32 %v3179_v41, %v981_v50 }
 0x1f2   : > { %v3195_v16 = vpop.f32.mrf.mxu0  ;;  %v2419_v5 = vpop.f32.mrf.mxu1 }
 0x1f3   : > { %v1249_v12 = vadd.f32 %v2419_v5, %v1123_v44 }
 0x1f4   : > { %v3197_v34 = vpop.f32.mrf.mxu0  ;;  %v1216_v23 = vpop.f32.mrf.mxu1 }
 0x1f5   : > { %v1247_v37 = vadd.f32 %v1216_v23, %v1121_v4 }
 0x1f6   : > { %v3199_v24 = vpop.f32.mrf.mxu0  ;;  %v2420_v59 = vpop.f32.mrf.mxu1 }
 0x1f7   : > { %v1250_v17 = vadd.f32 %v2420_v59, %v1124_v3  ;;  %v1461_v53 = vadd.f32 %v1430_v22, %v1247_v37  ;;  %v1126_v22 = vadd.f32 %v3181_v38, %v973_v46 }
 0x1f8   : > { %v3201_v9 = vpop.f32.mrf.mxu0  ;;  %v1219_v18 = vpop.f32.mrf.mxu1 }
 0x1f9   : > { %v1248_v29 = vadd.f32 %v1219_v18, %v1122_v33  ;;  %v1464_v57 = vadd.f32 %v3183_v47, %v1250_v17 }
 0x1fa   : > { %v3203_v42 = vpop.f32.mrf.mxu0  ;;  %v2423_v21 = vpop.f32.mrf.mxu1 }
 0x1fb   : > { %3272 = vst [vmem:[#allocation3_spill] sm:$0xff] %v3203_v42  ;;  %v1253_v61 = vadd.f32 %v2423_v21, %v1127_v2  ;;  %v1462_v11 = vadd.f32 %v3185_v20, %v1248_v29  ;;  %v2306_v20 = vld [vmem:[%s3260_s5] ss:$0 sm:$0xff] }
 0x1fc   : > { %v1232_v54 = vpop.f32.mrf.mxu1  ;;  %v3205_v55 = vpop.f32.mrf.mxu0 }
 0x1fd   : > { %3273 = vst [vmem:[#allocation4_spill] sm:$0xff] %v3205_v55  ;;  %v1251_v5 = vadd.f32 %v1232_v54, %v1125_v25  ;;  %v1467_v43 = vadd.f32 %v3187_v30, %v1253_v61 }
 0x1fe   : > { %v2424_v35 = vpop.f32.mrf.mxu1  ;;  %v3207_v36 = vpop.f32.mrf.mxu0 }
 0x1ff   : > { %3274 = vst [vmem:[#allocation5_spill] sm:$0xff] %v3207_v36  ;;  %v1463_v36 = vadd.f32 %v2429_v63, %v1249_v12  ;;  %v1254_v23 = vadd.f32 %v2424_v35, %v1128_v26  ;;  %v1465_v41 = vadd.f32 %v3189_v40, %v1251_v5 }
 0x200   : > { %v1235_v49 = vpop.f32.mrf.mxu1  ;;  %v2469_v28 = vpop.f32.mrf.mxu0 }
 0x201   : > { %v1252_v21 = vadd.f32 %v1235_v49, %v1126_v22 }
 0x202   : > { %v2439_v0 = vpop.f32.mrf.mxu1  ;;  %v2055_v55 = vpop.f32.mrf.mxu0  ;;  %v3275_v4 = vld [vmem:[#allocation3_spill] sm:$0xff] }
 0x203   : > { %v1605_v58 = vadd.f32 %v2439_v0, %v1463_v36 }
 0x204   : > { %v1572_v56 = vpop.f32.mrf.mxu1  ;;  %v2470_v7 = vpop.f32.mrf.mxu0  ;;  %v3276_v17 = vld [vmem:[#allocation4_spill] sm:$0xff] }
 0x205   : > { %v1603_v14 = vadd.f32 %v1572_v56, %v1461_v53  ;;  %v1732_v1 = vadd.f32 %v2449_v51, %v1605_v58  ;;  %v1466_v56 = vadd.f32 %v3193_v45, %v1252_v21 }
 0x206   : > { %v2440_v62 = vpop.f32.mrf.mxu1  ;;  %v2058_v39 = vpop.f32.mrf.mxu0  ;;  %v3277_v53 = vld [vmem:[#allocation5_spill] sm:$0xff] }
 0x207   : > { %v1606_v27 = vadd.f32 %v2440_v62, %v1464_v57  ;;  %v1730_v47 = vadd.f32 %v3195_v16, %v1603_v14 }
 0x208   : > { %v1575_v31 = vpop.f32.mrf.mxu1  ;;  %v2473_v30 = vpop.f32.mrf.mxu0 }
 0x209   : > { %v1604_v59 = vadd.f32 %v1575_v31, %v1462_v11  ;;  %v1733_v52 = vadd.f32 %v3197_v34, %v1606_v27 }
 0x20a   : > { %v2443_v42 = vpop.f32.mrf.mxu1 }
 0x20b   : > { %v1609_v54 = vadd.f32 %v2443_v42, %v1467_v43  ;;  %v1468_v42 = vadd.f32 %v3191_v32, %v1254_v23  ;;  %v1731_v13 = vadd.f32 %v3199_v24, %v1604_v59  ;;  %v2071_v32 = vpop.f32.mrf.mxu0 }
 0x20c   : > { %v1588_v6 = vpop.f32.mrf.mxu1 }
 0x20d   : > { %v1607_v16 = vadd.f32 %v1588_v6, %v1465_v41  ;;  %v1736_v8 = vadd.f32 %v3201_v9, %v1609_v54  ;;  %v2474_v50 = vpop.f32.mrf.mxu0 }
 0x20e   : > { %v2444_v10 = vpop.f32.mrf.mxu1 }
 0x20f   : > { %v1610_v44 = vadd.f32 %v2444_v10, %v1468_v42  ;;  %v2074_v14 = vpop.f32.mrf.mxu0 }
 0x210   : > { %v1591_v63 = vpop.f32.mrf.mxu1 }
 0x211   : > { %v1608_v60 = vadd.f32 %v1591_v63, %v1466_v56  ;;  %v1737_v33 = vadd.f32 %v3276_v17, %v1610_v44 }
 0x212   : > { %v2459_v15 = vpop.f32.mrf.mxu1 }
 0x213   : > { %v1946_v18 = vadd.f32 %v2459_v15, %v1732_v1  ;;  %v1735_v46 = vadd.f32 %v3277_v53, %v1608_v60 }
 0x214   : > { %v1913_v51 = vpop.f32.mrf.mxu1 }
 0x215   : > { %v2088_v35 = vadd.f32 %v2469_v28, %v1946_v18  ;;  %v1944_v38 = vadd.f32 %v1913_v51, %v1730_v47 }
 0x216   : > { %v2460_v40 = vpop.f32.mrf.mxu1 }
 0x217   : > { %v2103_v49 = vadd.f32 %v2306_v20, %v2088_v35  ;;  %v2086_v36 = vadd.f32 %v2055_v55, %v1944_v38  ;;  %v1947_v0 = vadd.f32 %v2460_v40, %v1733_v52  ;;  %v1734_v55 = vadd.f32 %v3275_v4, %v1607_v16 }
 0x218   : > { %v1916_v34 = vpop.f32.mrf.mxu1 }
 0x219   : > { %2111 = vst.msk [vmem:[%s3227_s22 + $0x10] sm:$0xff] %vm802_vm4, %v2103_v49  ;;  %v2101_v28 = vadd.f32 %v2306_v20, %v2086_v36  ;;  %v2089_v62 = vadd.f32 %v2470_v7, %v1947_v0  ;;  %v1945_v19 = vadd.f32 %v1916_v34, %v1731_v13 }
 0x21a   : > { %v2463_v12 = vpop.f32.mrf.mxu1 }
 0x21b   : > { %2109 = vst.msk [vmem:[%s3227_s22] sm:$0xff] %vm802_vm4, %v2101_v28  ;;  %v2104_v24 = vadd.f32 %v2306_v20, %v2089_v62  ;;  %v2087_v45 = vadd.f32 %v2058_v39, %v1945_v19  ;;  %v1950_v31 = vadd.f32 %v2463_v12, %v1736_v8 }
 0x21c   : > { %v1929_v37 = vpop.f32.mrf.mxu1 }
 0x21d   : > { %2112 = vst.msk [vmem:[%s3227_s22 + $0x18] sm:$0xff] %vm802_vm4, %v2104_v24  ;;  %v2102_v9 = vadd.f32 %v2306_v20, %v2087_v45  ;;  %v2092_v3 = vadd.f32 %v2473_v30, %v1950_v31  ;;  %v1948_v48 = vadd.f32 %v1929_v37, %v1734_v55 }
 0x21e   : > { %v2464_v2 = vpop.f32.mrf.mxu1 }
 0x21f   : > { %2110 = vst.msk [vmem:[%s3227_s22 + $0x8] sm:$0xff] %vm802_vm4, %v2102_v9  ;;  %v2107_v6 = vadd.f32 %v2306_v20, %v2092_v3  ;;  %v2090_v29 = vadd.f32 %v2071_v32, %v1948_v48  ;;  %v1951_v58 = vadd.f32 %v2464_v2, %v1737_v33 }
 0x220   : > { %v1932_v61 = vpop.f32.mrf.mxu1 }
 0x221   : > { %2115 = vst.msk [vmem:[%s3227_s22 + $0x30] sm:$0xff] %vm802_vm4, %v2107_v6  ;;  %v2105_v25 = vadd.f32 %v2306_v20, %v2090_v29  ;;  %v2093_v7 = vadd.f32 %v2474_v50, %v1951_v58  ;;  %v1949_v10 = vadd.f32 %v1932_v61, %v1735_v46 }
 0x223   : > { %2113 = vst.msk [vmem:[%s3227_s22 + $0x20] sm:$0xff] %vm802_vm4, %v2105_v25  ;;  %v2108_v57 = vadd.f32 %v2306_v20, %v2093_v7  ;;  %v2091_v5 = vadd.f32 %v2074_v14, %v1949_v10 }
 0x225   : > { %2116 = vst.msk [vmem:[%s3227_s22 + $0x38] sm:$0xff] %vm802_vm4, %v2108_v57  ;;  %v2106_v26 = vadd.f32 %v2306_v20, %v2091_v5 }
 0x227   : > { %2114 = vst.msk [vmem:[%s3227_s22 + $0x28] sm:$0xff] %vm802_vm4, %v2106_v26 }
 0x228 PF: > { %s16_s21 = sadd.s32 1, %s2519_s21  }
 0x229   : > { %p13_p4 = scmp.ge.s32.totalorder %s16_s21, 4  }
 0x22b   :  { %15 = sbr.rel (!%p13_p4) target bundleno = 1 (0x1), region = 85 }

</bundles_post_ra>
